<compile_context>
chip_gen: v5e
topology: v5e:2x2
jax: 0.10.0
libtpu: 0.0.40
codegen_flags: <defaults>
</compile_context>

<pallas_src>
import functools
import jax
import jax.numpy as jnp
from jax.experimental import pallas as pl
from jax.experimental.pallas import tpu as pltpu

EPS = 1e-5
LANE = 128          # lane width: pad Cout to a multiple of this (dense stores)
K_PACK = 16         # bf16 sublane pack: pad contraction dims to a multiple of this
TM_DEFAULT = 512    # target rows per M tile (rounded to a whole number of images)
VMEM_LIMIT = 32 * 1024 * 1024


def _round_up(x, m):
    return (x + m - 1) // m * m


def _images_per_tile(n, howo, tm):
    """Largest divisor NB of n with NB*howo <= tm (at least 1)."""
    nb = max(1, min(n, tm // max(howo, 1)))
    while n % nb:
        nb -= 1
    return nb


# ---------------- Pallas kernel A (fused): 3x3 stride-1 conv + stats ----------
def _conv3x3s1_stats_kernel(xs_ref, w_ref, y_ref, stats_ref, acc_ref, *, Ho, Wo):
    """In-kernel im2col: 9-tap MXU accumulation for one image + cross-image
    per-channel sum / sum-of-squares (train-mode BN statistics)."""
    @pl.when(pl.program_id(0) == 0)
    def _init():
        stats_ref[...] = jnp.zeros_like(stats_ref)

    HoWo = Ho * Wo
    for kh in range(3):
        for kw in range(3):
            # xs_ref[kw] holds the kw-shifted padded image flattened to
            # (Hp*Wo, Cin); the kh shift is a contiguous, Wo-aligned row slice.
            xt = xs_ref[kw, pl.ds(kh * Wo, HoWo), :]             # (HoWo, Cin) bf16
            contrib = jnp.dot(xt, w_ref[kh * 3 + kw],
                              preferred_element_type=jnp.float32)
            if kh == 0 and kw == 0:
                acc_ref[...] = contrib
            else:
                acc_ref[...] += contrib

    y = acc_ref[...]                                             # f32 accumulator
    y_ref[...] = y.astype(y_ref.dtype)                           # bf16 to HBM
    col_sum = jnp.sum(y, axis=0, keepdims=True)
    col_sq = jnp.sum(y * y, axis=0, keepdims=True)
    stats_ref[...] = stats_ref[...] + jnp.concatenate([col_sum, col_sq], axis=0)


def conv3x3_s1_stats(x_nhwc_bf16, w_hwio, *, out_dtype=jnp.bfloat16):
    """3x3 / stride-1 / pad-1 conv with in-kernel im2col (tap accumulation).

    x: (N, H, W, Cin) bf16, w: (3, 3, Cin, Cout).  Requires (H*W) % 8 == 0.
    Returns y (N*H*W, Cp) in out_dtype and per-channel (sum, sumsq) over all rows.
    """
    N, H, W, Cin = x_nhwc_bf16.shape
    Cout = w_hwio.shape[-1]
    Ho, Wo = H, W
    HoWo = Ho * Wo
    Hp = H + 2
    Cp = _round_up(Cout, LANE)
    Cinp = _round_up(Cin, K_PACK)

    # Spatial zero-pad (+ channel pad to the bf16 pack), then build the three
    # kw-shifted slabs, each flattened to (N, Hp*Wo, Cinp).  ~3x activation
    # bytes instead of the 9x materialized im2col.
    xp = jnp.pad(x_nhwc_bf16, ((0, 0), (1, 1), (1, 1), (0, Cinp - Cin)))
    xs = jnp.stack([xp[:, :, kw:kw + Wo, :] for kw in range(3)], axis=0)
    xs = xs.reshape(3, N, Hp * Wo, Cinp)

    wt = jnp.pad(w_hwio.astype(jnp.bfloat16),
                 ((0, 0), (0, 0), (0, Cinp - Cin), (0, Cp - Cout)))
    wt = wt.reshape(9, Cinp, Cp)

    kernel = functools.partial(_conv3x3s1_stats_kernel, Ho=Ho, Wo=Wo)
    y, stats = pl.pallas_call(
        kernel,
        out_shape=(jax.ShapeDtypeStruct((N * HoWo, Cp), out_dtype),
                   jax.ShapeDtypeStruct((2, Cp), jnp.float32)),
        grid=(N,),                                   # one image per step
        in_specs=[
            pl.BlockSpec((3, None, Hp * Wo, Cinp), lambda n: (0, n, 0, 0)),
            pl.BlockSpec((9, Cinp, Cp), lambda n: (0, 0, 0)),   # grid-invariant
        ],
        out_specs=(
            pl.BlockSpec((HoWo, Cp), lambda n: (n, 0)),         # lane-dense y
            pl.BlockSpec((2, Cp), lambda n: (0, 0)),            # resident stats
        ),
        scratch_shapes=[pltpu.VMEM((HoWo, Cp), jnp.float32)],   # f32 accumulator
        compiler_params=pltpu.CompilerParams(
            dimension_semantics=("arbitrary",),      # stats accumulate across grid
            vmem_limit_bytes=VMEM_LIMIT),
    )(xs, wt)
    return y, stats[0], stats[1]


# ------------- Pallas kernel A (fallback): im2col matmul + stats --------------
def _matmul_stats_kernel(p_ref, w_ref, y_ref, stats_ref):
    @pl.when(pl.program_id(0) == 0)
    def _init():
        stats_ref[...] = jnp.zeros_like(stats_ref)

    y = jnp.dot(p_ref[...], w_ref[...], preferred_element_type=jnp.float32)
    y_ref[...] = y.astype(y_ref.dtype)
    col_sum = jnp.sum(y, axis=0, keepdims=True)
    col_sq = jnp.sum(y * y, axis=0, keepdims=True)
    stats_ref[...] = stats_ref[...] + jnp.concatenate([col_sum, col_sq], axis=0)


def conv_matmul_stats(patches, w_mat, *, tm=TM_DEFAULT, out_dtype=jnp.bfloat16):
    """Generic conv as im2col matmul (used for stride-2 conv1 / 1x1 shortcut)."""
    M, K = patches.shape
    Cout = w_mat.shape[1]
    Kp = _round_up(K, K_PACK)
    Cp = _round_up(Cout, LANE)
    TM = min(tm, _round_up(M, 8))
    Mp = _round_up(M, TM)

    p = jnp.pad(patches.astype(jnp.bfloat16), ((0, Mp - M), (0, Kp - K)))
    w = jnp.pad(w_mat.astype(jnp.bfloat16), ((0, Kp - K), (0, Cp - Cout)))

    y, stats = pl.pallas_call(
        _matmul_stats_kernel,
        out_shape=(jax.ShapeDtypeStruct((Mp, Cp), out_dtype),
                   jax.ShapeDtypeStruct((2, Cp), jnp.float32)),
        grid=(Mp // TM,),
        in_specs=[pl.BlockSpec((TM, Kp), lambda i: (i, 0)),
                  pl.BlockSpec((Kp, Cp), lambda i: (0, 0))],
        out_specs=(pl.BlockSpec((TM, Cp), lambda i: (i, 0)),
                   pl.BlockSpec((2, Cp), lambda i: (0, 0))),
        compiler_params=pltpu.CompilerParams(
            dimension_semantics=("arbitrary",),
            vmem_limit_bytes=VMEM_LIMIT),
    )(p, w)
    return y[:M], stats[0], stats[1]


# --------------------------- Pallas kernel B ----------------------------------
def _affine_relu_kernel(*refs, has_res):
    """out = relu(y*scale + shift [+ res*res_scale + res_shift]) (f32 math)."""
    if has_res:
        y_ref, s_ref, t_ref, r_ref, rs_ref, rt_ref, o_ref = refs
    else:
        y_ref, s_ref, t_ref, o_ref = refs
    out = y_ref[...].astype(jnp.float32) * s_ref[...] + t_ref[...]
    if has_res:
        out = out + (r_ref[...].astype(jnp.float32) * rs_ref[...] + rt_ref[...])
    o_ref[...] = jnp.maximum(out, 0.0).astype(o_ref.dtype)


def affine_relu_pallas(y, scale, shift, residual=None, res_scale=None,
                       res_shift=None, out_dtype=jnp.float32, tm=TM_DEFAULT):
    M, Cp = y.shape
    TM = min(tm, M)
    assert M % TM == 0, "row tile must divide the row count"

    inputs = [y, scale, shift]
    in_specs = [pl.BlockSpec((TM, Cp), lambda i: (i, 0)),
                pl.BlockSpec((1, Cp), lambda i: (0, 0)),
                pl.BlockSpec((1, Cp), lambda i: (0, 0))]
    if residual is not None:
        inputs += [residual, res_scale, res_shift]
        in_specs += [pl.BlockSpec((TM, Cp), lambda i: (i, 0)),
                     pl.BlockSpec((1, Cp), lambda i: (0, 0)),
                     pl.BlockSpec((1, Cp), lambda i: (0, 0))]

    kernel = functools.partial(_affine_relu_kernel, has_res=residual is not None)
    return pl.pallas_call(
        kernel,
        out_shape=jax.ShapeDtypeStruct((M, Cp), out_dtype),
        grid=(M // TM,),
        in_specs=in_specs,
        out_specs=pl.BlockSpec((TM, Cp), lambda i: (i, 0)),
        compiler_params=pltpu.CompilerParams(
            dimension_semantics=("parallel",),       # independent M tiles
            vmem_limit_bytes=VMEM_LIMIT),
    )(*inputs)


# ------------------------------- JAX glue -------------------------------------
def im2col(x_nhwc, ksize, stride, pad):
    N, H, W, C = x_nhwc.shape
    xp = jnp.pad(x_nhwc, ((0, 0), (pad, pad), (pad, pad), (0, 0)))
    Ho = (H + 2 * pad - ksize) // stride + 1
    Wo = (W + 2 * pad - ksize) // stride + 1
    cols = []
    for kh in range(ksize):
        for kw in range(ksize):
            cols.append(xp[:, kh:kh + (Ho - 1) * stride + 1:stride,
                              kw:kw + (Wo - 1) * stride + 1:stride, :])
    patches = jnp.concatenate(cols, axis=-1)                 # (N, Ho, Wo, k*k*C)
    return patches.reshape(N * Ho * Wo, ksize * ksize * C), (Ho, Wo)


def bn_fold(col_sum, col_sumsq, gamma, beta, m_true, cp):
    """Fold train-mode BN (batch stats) into per-channel scale/shift, padded to cp."""
    mean = col_sum / float(m_true)
    var = jnp.maximum(col_sumsq / float(m_true) - mean * mean, 0.0)
    g = jnp.pad(gamma.astype(jnp.float32), (0, cp - gamma.shape[0]))
    b = jnp.pad(beta.astype(jnp.float32), (0, cp - beta.shape[0]))
    scale = g * jax.lax.rsqrt(var + EPS)
    shift = b - mean * scale
    return scale.reshape(1, cp), shift.reshape(1, cp)


def basic_block_forward(x_nchw, params, tm=TM_DEFAULT):
    stride = params["stride"]
    x = jnp.transpose(x_nchw, (0, 2, 3, 1)).astype(jnp.float32)   # NCHW -> NHWC
    N, H, W, Cin = x.shape
    P = params["w1"].shape[-1]
    xb = x.astype(jnp.bfloat16)

    Ho = (H + 2 - 3) // stride + 1
    Wo = (W + 2 - 3) // stride + 1
    HoWo = Ho * Wo
    if HoWo % 8:
        raise ValueError("Ho*Wo must be a multiple of 8 for the row tiling")
    tm_rows = _images_per_tile(N, HoWo, tm) * HoWo   # exact-divisor row tile
    M1 = M2 = N * HoWo

    # ---- conv1 (3x3, stride, pad=1) + bn1 + relu ----
    if stride == 1:
        y1, s1, q1 = conv3x3_s1_stats(xb, params["w1"])          # fused im2col
    else:
        p1, _ = im2col(xb, 3, stride, 1)                         # fallback path
        y1, s1, q1 = conv_matmul_stats(p1, params["w1"].reshape(9 * Cin, P),
                                       tm=tm_rows)
    Cp = y1.shape[1]
    sc1, sh1 = bn_fold(s1, q1, params["g1"], params["b1"], M1, Cp)
    out1 = affine_relu_pallas(y1, sc1, sh1, out_dtype=jnp.bfloat16, tm=tm_rows)
    out1_nhwc = out1[:, :P].reshape(N, Ho, Wo, P)                # bf16 intermediate

    # ---- conv2 (3x3, stride=1, pad=1) + bn2 ----
    y2, s2, q2 = conv3x3_s1_stats(out1_nhwc, params["w2"])
    Cp2 = y2.shape[1]
    sc2, sh2 = bn_fold(s2, q2, params["g2"], params["b2"], M2, Cp2)

    # ---- shortcut: identity or 1x1 conv(stride) + bn (BN folded into epilogue) ----
    if stride != 1 or Cin != P:
        psc, _ = im2col(xb, 1, stride, 0)                        # strided subsample
        ysc, ssc, qsc = conv_matmul_stats(psc, params["wsc"].reshape(Cin, P),
                                          tm=tm_rows)
        scs, shs = bn_fold(ssc, qsc, params["gsc"], params["bsc"], M2, Cp2)
        res = ysc                                                # (M2, Cp2) bf16
    else:
        # bf16, channel-padded identity residual (no f32 materialization)
        res = jnp.pad(xb.reshape(M2, Cin), ((0, 0), (0, Cp2 - Cin)))
        scs = jnp.ones((1, Cp2), jnp.float32)
        shs = jnp.zeros((1, Cp2), jnp.float32)

    # ---- fused epilogue: bn2 affine + shortcut-bn affine + residual + relu ----
    out = affine_relu_pallas(y2, sc2, sh2, residual=res, res_scale=scs,
                             res_shift=shs, out_dtype=jnp.float32, tm=tm_rows)
    out = out[:, :P].reshape(N, Ho, Wo, P)
    return jnp.transpose(out, (0, 3, 1, 2))                      # back to NCHW


def init_params(key, in_planes, planes, stride):
    ks = jax.random.split(key, 10)

    def conv_init(k, kh, kw, ci, co):
        return jax.random.normal(k, (kh, kw, ci, co), jnp.float32) / jnp.sqrt(kh * kw * ci)

    params = {
        "stride": stride,
        "w1": conv_init(ks[0], 3, 3, in_planes, planes),
        "g1": 1.0 + 0.1 * jax.random.normal(ks[1], (planes,), jnp.float32),
        "b1": 0.1 * jax.random.normal(ks[2], (planes,), jnp.float32),
        "w2": conv_init(ks[3], 3, 3, planes, planes),
        "g2": 1.0 + 0.1 * jax.random.normal(ks[4], (planes,), jnp.float32),
        "b2": 0.1 * jax.random.normal(ks[5], (planes,), jnp.float32),
    }
    if stride != 1 or in_planes != planes:
        params["wsc"] = conv_init(ks[6], 1, 1, in_planes, planes)
        params["gsc"] = 1.0 + 0.1 * jax.random.normal(ks[7], (planes,), jnp.float32)
        params["bsc"] = 0.1 * jax.random.normal(ks[8], (planes,), jnp.float32)
    return params


# --------------------------- pure-JAX reference -------------------------------
def _bn_ref(y, gamma, beta):
    mean = jnp.mean(y, axis=(0, 1, 2), keepdims=True)
    var = jnp.mean(jnp.square(y - mean), axis=(0, 1, 2), keepdims=True)
    return (y - mean) * jax.lax.rsqrt(var + EPS) * gamma + beta


def basic_block_reference(x_nchw, params):
    stride = params["stride"]
    x = jnp.transpose(x_nchw, (0, 2, 3, 1)).astype(jnp.float32)
    dn = ("NHWC", "HWIO", "NHWC")
    y = jax.lax.conv_general_dilated(x, params["w1"], (stride, stride),
                                     [(1, 1), (1, 1)], dimension_numbers=dn)
    y = jax.nn.relu(_bn_ref(y, params["g1"], params["b1"]))
    y2 = jax.lax.conv_general_dilated(y, params["w2"], (1, 1),
                                      [(1, 1), (1, 1)], dimension_numbers=dn)
    y2 = _bn_ref(y2, params["g2"], params["b2"])
    if "wsc" in params:
        sc = jax.lax.conv_general_dilated(x, params["wsc"], (stride, stride),
                                          [(0, 0), (0, 0)], dimension_numbers=dn)
        sc = _bn_ref(sc, params["gsc"], params["bsc"])
    else:
        sc = x
    return jnp.transpose(jax.nn.relu(y2 + sc), (0, 3, 1, 2))


# ---------------------------------- main ---------------------------------------
if __name__ == "__main__":
    key = jax.random.PRNGKey(0)
    kx, kp1, kp2 = jax.random.split(key, 3)
    x = jax.random.normal(kx, (2, 4, 16, 16), jnp.float32)   # NCHW, like PyTorch

    # tolerance reflects bf16 MXU inputs and the (new) bf16 conv intermediates
    TOL = dict(atol=7.5e-2, rtol=7.5e-2)

    # config A: identity shortcut (in_planes == planes, stride=1)
    # -> both 3x3 convs use the fused in-kernel-im2col path (grid over 2 images,
    #    exercising the cross-step BN stats accumulator).
    params_a = init_params(kp1, 4, 4, 1)
    out_a = jax.block_until_ready(basic_block_forward(x, params_a))
    ref_a = basic_block_reference(x, params_a)
    assert out_a.shape == (2, 4, 16, 16)
    err_a = float(jnp.max(jnp.abs(out_a - ref_a)))
    assert bool(jnp.allclose(out_a, ref_a, **TOL)), f"max err A = {err_a}"

    # config B: projection shortcut (stride=2, channels 4 -> 8)
    # -> conv1 + 1x1 shortcut use the fallback im2col matmul path, conv2 fused.
    params_b = init_params(kp2, 4, 8, 2)
    out_b = jax.block_until_ready(basic_block_forward(x, params_b))
    ref_b = basic_block_reference(x, params_b)
    assert out_b.shape == (2, 8, 8, 8)
    err_b = float(jnp.max(jnp.abs(out_b - ref_b)))
    assert bool(jnp.allclose(out_b, ref_b, **TOL)), f"max err B = {err_b}"

    print("KERNEL_OK")
</pallas_src>

<mosaic_0001>
module attributes {stable_mosaic.version = 11 : i64} {
  func.func @_conv3x3s1_stats_kernel(%arg0: i32, %arg1: memref<3x1x288x16xbf16, #tpu.memory_space<vmem>>, %arg2: memref<9x16x128xbf16, #tpu.memory_space<vmem>>, %arg3: memref<256x128xbf16, #tpu.memory_space<vmem>>, %arg4: memref<2x128xf32, #tpu.memory_space<vmem>>, %arg5: memref<256x128xf32, #tpu.memory_space<vmem>>) attributes {dimension_semantics = [#tpu.dimension_semantics<arbitrary>], iteration_bounds = array<i64: 2>, scalar_prefetch = 0 : i64, scratch_operands = 1 : i64, tpu.core_type = #tpu.core_type<tc>, window_params = [{transform_indices = @transform_0, window_bounds = array<i64: 3, 1, 288, 16>}, {pipeline_mode = #tpu.pipeline_mode<synchronous>, transform_indices = @transform_1, window_bounds = array<i64: 9, 16, 128>}, {transform_indices = @transform_2, window_bounds = array<i64: 256, 128>}, {pipeline_mode = #tpu.pipeline_mode<synchronous>, transform_indices = @transform_3, window_bounds = array<i64: 2, 128>}]} {
    %c0_i32 = arith.constant 0 : i32
    %0 = arith.cmpi eq, %arg0, %c0_i32 : i32
    %1 = arith.extui %0 : i1 to i32
    %c0_i32_0 = arith.constant 0 : i32
    %2 = arith.cmpi ne, %1, %c0_i32_0 : i32
    scf.if %2 {
      %cst_105 = arith.constant 0.000000e+00 : f32
      %85 = vector.broadcast %cst_105 : f32 to vector<2x128xf32>
      %c0_106 = arith.constant 0 : index
      %c0_107 = arith.constant 0 : index
      %86 = vector.load %arg4[%c0_106, %c0_107] : memref<2x128xf32, #tpu.memory_space<vmem>>, vector<2x128xf32>
      tpu.vector_store %arg4[%c0_106, %c0_107], %85 {strides = array<i32>} : memref<2x128xf32, #tpu.memory_space<vmem>>, vector<2x128xf32>,
    } else {
    }
    %c0 = arith.constant 0 : index
    %c0_1 = arith.constant 0 : index
    %c0_2 = arith.constant 0 : index
    %c0_3 = arith.constant 0 : index
    %3 = vector.load %arg1[%c0, %c0_1, %c0_2, %c0_3] : memref<3x1x288x16xbf16, #tpu.memory_space<vmem>>, vector<1x1x256x16xbf16>
    %4 = vector.shape_cast %3 : vector<1x1x256x16xbf16> to vector<256x16xbf16>
    %c0_4 = arith.constant 0 : index
    %c0_5 = arith.constant 0 : index
    %c0_6 = arith.constant 0 : index
    %5 = vector.load %arg2[%c0_4, %c0_5, %c0_6] : memref<9x16x128xbf16, #tpu.memory_space<vmem>>, vector<1x16x128xbf16>
    %6 = vector.shape_cast %5 : vector<1x16x128xbf16> to vector<16x128xbf16>
    %cst = arith.constant dense<0.000000e+00> : vector<256x128xf32>
    %7 = tpu.matmul %4, %6, %cst {dimension_numbers = #tpu.dot_dimension_numbers<[1], [0], [0], [1], [0, 0, 1, 1], [], []>} : vector<256x16xbf16>, vector<16x128xbf16>, vector<256x128xf32> -> vector<256x128xf32>
    %c0_7 = arith.constant 0 : index
    %c0_8 = arith.constant 0 : index
    %8 = vector.load %arg5[%c0_7, %c0_8] : memref<256x128xf32, #tpu.memory_space<vmem>>, vector<256x128xf32>
    tpu.vector_store %arg5[%c0_7, %c0_8], %7 {strides = array<i32>} : memref<256x128xf32, #tpu.memory_space<vmem>>, vector<256x128xf32>,
    %c1 = arith.constant 1 : index
    %c0_9 = arith.constant 0 : index
    %c0_10 = arith.constant 0 : index
    %c0_11 = arith.constant 0 : index
    %9 = vector.load %arg1[%c1, %c0_9, %c0_10, %c0_11] : memref<3x1x288x16xbf16, #tpu.memory_space<vmem>>, vector<1x1x256x16xbf16>
    %10 = vector.shape_cast %9 : vector<1x1x256x16xbf16> to vector<256x16xbf16>
    %c1_12 = arith.constant 1 : index
    %c0_13 = arith.constant 0 : index
    %c0_14 = arith.constant 0 : index
    %11 = vector.load %arg2[%c1_12, %c0_13, %c0_14] : memref<9x16x128xbf16, #tpu.memory_space<vmem>>, vector<1x16x128xbf16>
    %12 = vector.shape_cast %11 : vector<1x16x128xbf16> to vector<16x128xbf16>
    %cst_15 = arith.constant dense<0.000000e+00> : vector<256x128xf32>
    %13 = tpu.matmul %10, %12, %cst_15 {dimension_numbers = #tpu.dot_dimension_numbers<[1], [0], [0], [1], [0, 0, 1, 1], [], []>} : vector<256x16xbf16>, vector<16x128xbf16>, vector<256x128xf32> -> vector<256x128xf32>
    %c0_16 = arith.constant 0 : index
    %c0_17 = arith.constant 0 : index
    %14 = vector.load %arg5[%c0_16, %c0_17] : memref<256x128xf32, #tpu.memory_space<vmem>>, vector<256x128xf32>
    %15 = arith.addf %14, %13 : vector<256x128xf32>
    %c0_18 = arith.constant 0 : index
    %c0_19 = arith.constant 0 : index
    %16 = vector.load %arg5[%c0_18, %c0_19] : memref<256x128xf32, #tpu.memory_space<vmem>>, vector<256x128xf32>
    tpu.vector_store %arg5[%c0_18, %c0_19], %15 {strides = array<i32>} : memref<256x128xf32, #tpu.memory_space<vmem>>, vector<256x128xf32>,
    %c2 = arith.constant 2 : index
    %c0_20 = arith.constant 0 : index
    %c0_21 = arith.constant 0 : index
    %c0_22 = arith.constant 0 : index
    %17 = vector.load %arg1[%c2, %c0_20, %c0_21, %c0_22] : memref<3x1x288x16xbf16, #tpu.memory_space<vmem>>, vector<1x1x256x16xbf16>
    %18 = vector.shape_cast %17 : vector<1x1x256x16xbf16> to vector<256x16xbf16>
    %c2_23 = arith.constant 2 : index
    %c0_24 = arith.constant 0 : index
    %c0_25 = arith.constant 0 : index
    %19 = vector.load %arg2[%c2_23, %c0_24, %c0_25] : memref<9x16x128xbf16, #tpu.memory_space<vmem>>, vector<1x16x128xbf16>
    %20 = vector.shape_cast %19 : vector<1x16x128xbf16> to vector<16x128xbf16>
    %cst_26 = arith.constant dense<0.000000e+00> : vector<256x128xf32>
    %21 = tpu.matmul %18, %20, %cst_26 {dimension_numbers = #tpu.dot_dimension_numbers<[1], [0], [0], [1], [0, 0, 1, 1], [], []>} : vector<256x16xbf16>, vector<16x128xbf16>, vector<256x128xf32> -> vector<256x128xf32>
    %c0_27 = arith.constant 0 : index
    %c0_28 = arith.constant 0 : index
    %22 = vector.load %arg5[%c0_27, %c0_28] : memref<256x128xf32, #tpu.memory_space<vmem>>, vector<256x128xf32>
    %23 = arith.addf %22, %21 : vector<256x128xf32>
    %c0_29 = arith.constant 0 : index
    %c0_30 = arith.constant 0 : index
    %24 = vector.load %arg5[%c0_29, %c0_30] : memref<256x128xf32, #tpu.memory_space<vmem>>, vector<256x128xf32>
    tpu.vector_store %arg5[%c0_29, %c0_30], %23 {strides = array<i32>} : memref<256x128xf32, #tpu.memory_space<vmem>>, vector<256x128xf32>,
    %c0_31 = arith.constant 0 : index
    %c0_32 = arith.constant 0 : index
    %c16 = arith.constant 16 : index
    %c0_33 = arith.constant 0 : index
    %25 = vector.load %arg1[%c0_31, %c0_32, %c16, %c0_33] : memref<3x1x288x16xbf16, #tpu.memory_space<vmem>>, vector<1x1x256x16xbf16>
    %26 = vector.shape_cast %25 : vector<1x1x256x16xbf16> to vector<256x16xbf16>
    %c3 = arith.constant 3 : index
    %c0_34 = arith.constant 0 : index
    %c0_35 = arith.constant 0 : index
    %27 = vector.load %arg2[%c3, %c0_34, %c0_35] : memref<9x16x128xbf16, #tpu.memory_space<vmem>>, vector<1x16x128xbf16>
    %28 = vector.shape_cast %27 : vector<1x16x128xbf16> to vector<16x128xbf16>
    %cst_36 = arith.constant dense<0.000000e+00> : vector<256x128xf32>
    %29 = tpu.matmul %26, %28, %cst_36 {dimension_numbers = #tpu.dot_dimension_numbers<[1], [0], [0], [1], [0, 0, 1, 1], [], []>} : vector<256x16xbf16>, vector<16x128xbf16>, vector<256x128xf32> -> vector<256x128xf32>
    %c0_37 = arith.constant 0 : index
    %c0_38 = arith.constant 0 : index
    %30 = vector.load %arg5[%c0_37, %c0_38] : memref<256x128xf32, #tpu.memory_space<vmem>>, vector<256x128xf32>
    %31 = arith.addf %30, %29 : vector<256x128xf32>
    %c0_39 = arith.constant 0 : index
    %c0_40 = arith.constant 0 : index
    %32 = vector.load %arg5[%c0_39, %c0_40] : memref<256x128xf32, #tpu.memory_space<vmem>>, vector<256x128xf32>
    tpu.vector_store %arg5[%c0_39, %c0_40], %31 {strides = array<i32>} : memref<256x128xf32, #tpu.memory_space<vmem>>, vector<256x128xf32>,
    %c1_41 = arith.constant 1 : index
    %c0_42 = arith.constant 0 : index
    %c16_43 = arith.constant 16 : index
    %c0_44 = arith.constant 0 : index
    %33 = vector.load %arg1[%c1_41, %c0_42, %c16_43, %c0_44] : memref<3x1x288x16xbf16, #tpu.memory_space<vmem>>, vector<1x1x256x16xbf16>
    %34 = vector.shape_cast %33 : vector<1x1x256x16xbf16> to vector<256x16xbf16>
    %c4 = arith.constant 4 : index
    %c0_45 = arith.constant 0 : index
    %c0_46 = arith.constant 0 : index
    %35 = vector.load %arg2[%c4, %c0_45, %c0_46] : memref<9x16x128xbf16, #tpu.memory_space<vmem>>, vector<1x16x128xbf16>
    %36 = vector.shape_cast %35 : vector<1x16x128xbf16> to vector<16x128xbf16>
    %cst_47 = arith.constant dense<0.000000e+00> : vector<256x128xf32>
    %37 = tpu.matmul %34, %36, %cst_47 {dimension_numbers = #tpu.dot_dimension_numbers<[1], [0], [0], [1], [0, 0, 1, 1], [], []>} : vector<256x16xbf16>, vector<16x128xbf16>, vector<256x128xf32> -> vector<256x128xf32>
    %c0_48 = arith.constant 0 : index
    %c0_49 = arith.constant 0 : index
    %38 = vector.load %arg5[%c0_48, %c0_49] : memref<256x128xf32, #tpu.memory_space<vmem>>, vector<256x128xf32>
    %39 = arith.addf %38, %37 : vector<256x128xf32>
    %c0_50 = arith.constant 0 : index
    %c0_51 = arith.constant 0 : index
    %40 = vector.load %arg5[%c0_50, %c0_51] : memref<256x128xf32, #tpu.memory_space<vmem>>, vector<256x128xf32>
    tpu.vector_store %arg5[%c0_50, %c0_51], %39 {strides = array<i32>} : memref<256x128xf32, #tpu.memory_space<vmem>>, vector<256x128xf32>,
    %c2_52 = arith.constant 2 : index
    %c0_53 = arith.constant 0 : index
    %c16_54 = arith.constant 16 : index
    %c0_55 = arith.constant 0 : index
    %41 = vector.load %arg1[%c2_52, %c0_53, %c16_54, %c0_55] : memref<3x1x288x16xbf16, #tpu.memory_space<vmem>>, vector<1x1x256x16xbf16>
    %42 = vector.shape_cast %41 : vector<1x1x256x16xbf16> to vector<256x16xbf16>
    %c5 = arith.constant 5 : index
    %c0_56 = arith.constant 0 : index
    %c0_57 = arith.constant 0 : index
    %43 = vector.load %arg2[%c5, %c0_56, %c0_57] : memref<9x16x128xbf16, #tpu.memory_space<vmem>>, vector<1x16x128xbf16>
    %44 = vector.shape_cast %43 : vector<1x16x128xbf16> to vector<16x128xbf16>
    %cst_58 = arith.constant dense<0.000000e+00> : vector<256x128xf32>
    %45 = tpu.matmul %42, %44, %cst_58 {dimension_numbers = #tpu.dot_dimension_numbers<[1], [0], [0], [1], [0, 0, 1, 1], [], []>} : vector<256x16xbf16>, vector<16x128xbf16>, vector<256x128xf32> -> vector<256x128xf32>
    %c0_59 = arith.constant 0 : index
    %c0_60 = arith.constant 0 : index
    %46 = vector.load %arg5[%c0_59, %c0_60] : memref<256x128xf32, #tpu.memory_space<vmem>>, vector<256x128xf32>
    %47 = arith.addf %46, %45 : vector<256x128xf32>
    %c0_61 = arith.constant 0 : index
    %c0_62 = arith.constant 0 : index
    %48 = vector.load %arg5[%c0_61, %c0_62] : memref<256x128xf32, #tpu.memory_space<vmem>>, vector<256x128xf32>
    tpu.vector_store %arg5[%c0_61, %c0_62], %47 {strides = array<i32>} : memref<256x128xf32, #tpu.memory_space<vmem>>, vector<256x128xf32>,
    %c0_63 = arith.constant 0 : index
    %c0_64 = arith.constant 0 : index
    %c32 = arith.constant 32 : index
    %c0_65 = arith.constant 0 : index
    %49 = vector.load %arg1[%c0_63, %c0_64, %c32, %c0_65] : memref<3x1x288x16xbf16, #tpu.memory_space<vmem>>, vector<1x1x256x16xbf16>
    %50 = vector.shape_cast %49 : vector<1x1x256x16xbf16> to vector<256x16xbf16>
    %c6 = arith.constant 6 : index
    %c0_66 = arith.constant 0 : index
    %c0_67 = arith.constant 0 : index
    %51 = vector.load %arg2[%c6, %c0_66, %c0_67] : memref<9x16x128xbf16, #tpu.memory_space<vmem>>, vector<1x16x128xbf16>
    %52 = vector.shape_cast %51 : vector<1x16x128xbf16> to vector<16x128xbf16>
    %cst_68 = arith.constant dense<0.000000e+00> : vector<256x128xf32>
    %53 = tpu.matmul %50, %52, %cst_68 {dimension_numbers = #tpu.dot_dimension_numbers<[1], [0], [0], [1], [0, 0, 1, 1], [], []>} : vector<256x16xbf16>, vector<16x128xbf16>, vector<256x128xf32> -> vector<256x128xf32>
    %c0_69 = arith.constant 0 : index
    %c0_70 = arith.constant 0 : index
    %54 = vector.load %arg5[%c0_69, %c0_70] : memref<256x128xf32, #tpu.memory_space<vmem>>, vector<256x128xf32>
    %55 = arith.addf %54, %53 : vector<256x128xf32>
    %c0_71 = arith.constant 0 : index
    %c0_72 = arith.constant 0 : index
    %56 = vector.load %arg5[%c0_71, %c0_72] : memref<256x128xf32, #tpu.memory_space<vmem>>, vector<256x128xf32>
    tpu.vector_store %arg5[%c0_71, %c0_72], %55 {strides = array<i32>} : memref<256x128xf32, #tpu.memory_space<vmem>>, vector<256x128xf32>,
    %c1_73 = arith.constant 1 : index
    %c0_74 = arith.constant 0 : index
    %c32_75 = arith.constant 32 : index
    %c0_76 = arith.constant 0 : index
    %57 = vector.load %arg1[%c1_73, %c0_74, %c32_75, %c0_76] : memref<3x1x288x16xbf16, #tpu.memory_space<vmem>>, vector<1x1x256x16xbf16>
    %58 = vector.shape_cast %57 : vector<1x1x256x16xbf16> to vector<256x16xbf16>
    %c7 = arith.constant 7 : index
    %c0_77 = arith.constant 0 : index
    %c0_78 = arith.constant 0 : index
    %59 = vector.load %arg2[%c7, %c0_77, %c0_78] : memref<9x16x128xbf16, #tpu.memory_space<vmem>>, vector<1x16x128xbf16>
    %60 = vector.shape_cast %59 : vector<1x16x128xbf16> to vector<16x128xbf16>
    %cst_79 = arith.constant dense<0.000000e+00> : vector<256x128xf32>
    %61 = tpu.matmul %58, %60, %cst_79 {dimension_numbers = #tpu.dot_dimension_numbers<[1], [0], [0], [1], [0, 0, 1, 1], [], []>} : vector<256x16xbf16>, vector<16x128xbf16>, vector<256x128xf32> -> vector<256x128xf32>
    %c0_80 = arith.constant 0 : index
    %c0_81 = arith.constant 0 : index
    %62 = vector.load %arg5[%c0_80, %c0_81] : memref<256x128xf32, #tpu.memory_space<vmem>>, vector<256x128xf32>
    %63 = arith.addf %62, %61 : vector<256x128xf32>
    %c0_82 = arith.constant 0 : index
    %c0_83 = arith.constant 0 : index
    %64 = vector.load %arg5[%c0_82, %c0_83] : memref<256x128xf32, #tpu.memory_space<vmem>>, vector<256x128xf32>
    tpu.vector_store %arg5[%c0_82, %c0_83], %63 {strides = array<i32>} : memref<256x128xf32, #tpu.memory_space<vmem>>, vector<256x128xf32>,
    %c2_84 = arith.constant 2 : index
    %c0_85 = arith.constant 0 : index
    %c32_86 = arith.constant 32 : index
    %c0_87 = arith.constant 0 : index
    %65 = vector.load %arg1[%c2_84, %c0_85, %c32_86, %c0_87] : memref<3x1x288x16xbf16, #tpu.memory_space<vmem>>, vector<1x1x256x16xbf16>
    %66 = vector.shape_cast %65 : vector<1x1x256x16xbf16> to vector<256x16xbf16>
    %c8 = arith.constant 8 : index
    %c0_88 = arith.constant 0 : index
    %c0_89 = arith.constant 0 : index
    %67 = vector.load %arg2[%c8, %c0_88, %c0_89] : memref<9x16x128xbf16, #tpu.memory_space<vmem>>, vector<1x16x128xbf16>
    %68 = vector.shape_cast %67 : vector<1x16x128xbf16> to vector<16x128xbf16>
    %cst_90 = arith.constant dense<0.000000e+00> : vector<256x128xf32>
    %69 = tpu.matmul %66, %68, %cst_90 {dimension_numbers = #tpu.dot_dimension_numbers<[1], [0], [0], [1], [0, 0, 1, 1], [], []>} : vector<256x16xbf16>, vector<16x128xbf16>, vector<256x128xf32> -> vector<256x128xf32>
    %c0_91 = arith.constant 0 : index
    %c0_92 = arith.constant 0 : index
    %70 = vector.load %arg5[%c0_91, %c0_92] : memref<256x128xf32, #tpu.memory_space<vmem>>, vector<256x128xf32>
    %71 = arith.addf %70, %69 : vector<256x128xf32>
    %c0_93 = arith.constant 0 : index
    %c0_94 = arith.constant 0 : index
    %72 = vector.load %arg5[%c0_93, %c0_94] : memref<256x128xf32, #tpu.memory_space<vmem>>, vector<256x128xf32>
    tpu.vector_store %arg5[%c0_93, %c0_94], %71 {strides = array<i32>} : memref<256x128xf32, #tpu.memory_space<vmem>>, vector<256x128xf32>,
    %c0_95 = arith.constant 0 : index
    %c0_96 = arith.constant 0 : index
    %73 = vector.load %arg5[%c0_95, %c0_96] : memref<256x128xf32, #tpu.memory_space<vmem>>, vector<256x128xf32>
    %74 = arith.truncf %73 : vector<256x128xf32> to vector<256x128xbf16>
    %c0_97 = arith.constant 0 : index
    %c0_98 = arith.constant 0 : index
    %75 = vector.load %arg3[%c0_97, %c0_98] : memref<256x128xbf16, #tpu.memory_space<vmem>>, vector<256x128xbf16>
    tpu.vector_store %arg3[%c0_97, %c0_98], %74 {strides = array<i32>} : memref<256x128xbf16, #tpu.memory_space<vmem>>, vector<256x128xbf16>,
    %cst_99 = arith.constant dense<0.000000e+00> : vector<128xf32>
    %76 = vector.multi_reduction <add>, %73, %cst_99 [0] : vector<256x128xf32> to vector<128xf32>
    %77 = vector.shape_cast %76 : vector<128xf32> to vector<1x128xf32>
    %78 = arith.mulf %73, %73 : vector<256x128xf32>
    %cst_100 = arith.constant dense<0.000000e+00> : vector<128xf32>
    %79 = vector.multi_reduction <add>, %78, %cst_100 [0] : vector<256x128xf32> to vector<128xf32>
    %80 = vector.shape_cast %79 : vector<128xf32> to vector<1x128xf32>
    %c0_101 = arith.constant 0 : index
    %c0_102 = arith.constant 0 : index
    %81 = vector.load %arg4[%c0_101, %c0_102] : memref<2x128xf32, #tpu.memory_space<vmem>>, vector<2x128xf32>
    %82 = tpu.concatenate %77, %80 in 0 : vector<1x128xf32>, vector<1x128xf32> -> vector<2x128xf32>
    %83 = arith.addf %81, %82 : vector<2x128xf32>
    %c0_103 = arith.constant 0 : index
    %c0_104 = arith.constant 0 : index
    %84 = vector.load %arg4[%c0_103, %c0_104] : memref<2x128xf32, #tpu.memory_space<vmem>>, vector<2x128xf32>
    tpu.vector_store %arg4[%c0_103, %c0_104], %83 {strides = array<i32>} : memref<2x128xf32, #tpu.memory_space<vmem>>, vector<2x128xf32>,
    return
  }
  func.func @transform_0(%arg0: i32) -> (i32, i32, i32, i32) {
    %c0_i32 = arith.constant 0 : i32
    %c0_i32_0 = arith.constant 0 : i32
    %c0_i32_1 = arith.constant 0 : i32
    %c0_i32_2 = arith.constant 0 : i32
    return %c0_i32, %arg0, %c0_i32_0, %c0_i32_1 : i32, i32, i32, i32
  }
  func.func @transform_1(%arg0: i32) -> (i32, i32, i32) {
    %c0_i32 = arith.constant 0 : i32
    %c0_i32_0 = arith.constant 0 : i32
    %c0_i32_1 = arith.constant 0 : i32
    %c0_i32_2 = arith.constant 0 : i32
    return %c0_i32, %c0_i32_0, %c0_i32_1 : i32, i32, i32
  }
  func.func @transform_2(%arg0: i32) -> (i32, i32) {
    %c0_i32 = arith.constant 0 : i32
    %c0_i32_0 = arith.constant 0 : i32
    return %arg0, %c0_i32 : i32, i32
  }
  func.func @transform_3(%arg0: i32) -> (i32, i32) {
    %c0_i32 = arith.constant 0 : i32
    %c0_i32_0 = arith.constant 0 : i32
    %c0_i32_1 = arith.constant 0 : i32
    return %c0_i32, %c0_i32_0 : i32, i32
  }
}

</mosaic_0001>

<bundles_post_ra>
// kernel: tpu_custom_call.1
= control target key start
LH: loop header
LB: loop body
LE: loop exit
PB: predicated region body
PF: predicated region fallthrough
CT: control target
= control target key end

     0   :  { %9 = vsyncpa [#allocation5], 0  ;;  %s6235_s0 = inlined_call_operand.vmem [shape: bf16[3,2,288,16], index: 0, kind: input, shape index: {}]   ;;  %s6236_s1 = inlined_call_operand.vmem [shape: bf16[9,16,128], index: 1, kind: input, shape index: {}]   ;;  %s6237_s2 = inlined_call_operand.hbm [shape: bf16[512,128], index: 2, kind: output, shape index: {0}]   ;;  %s6238_s3 = inlined_call_operand.hbm [shape: f32[2,128], index: 3, kind: output, shape index: {1}]  }
   0x1   :  { %11 = vsyncpa [#allocation5 + $0x1], 0 }
   0x2   :  { %12 = vsyncpa [#allocation7], 0  ;;  %s5488_s12 = smov 0   ;;  %s5490_s13 = smov 0  }
   0x3   :  { %s5492_s14 = smov 0   ;;  %s5494_s15 = smov 0  }
   0x4 LB: > { %s5509_s16 = sadd.s32 4294967295, %s5462_s15   ;;  %s4086_s17 = sadd.s32 4294967294, %s5462_s15   ;;  %s5462_s15 = sphi %s5494_s15, %s6244_s15   ;;  %s5458_s14 = sphi %s5492_s14, %s6243_s14   ;;  %s5454_s13 = sphi %s5490_s13, %s6242_s13   ;;  %s5450_s12 = sphi %s5488_s12, %s6241_s12  }
   0x5   : > { %s5513_s18 = sadd.s32 1, %s5462_s15   ;;  %s25_s19 = sadd.s32 1, %s5458_s14 }
   0x6   : > { %s22_s20 = ssub.s32 %s5462_s15, %s5513_s18  ;;  %p32_p0 = scmp.ne.s32.totalorder %s5458_s14, %s5454_s13 }
   0x7   : > { %p23_p1 = scmp.eq.s32.totalorder %s22_s20, 0  ;;  %p33_p2 = scmp.eq.s32.totalorder %s5462_s15, 0 }
   0x8   : > { %p83_p3 = scmp.eq.s32.totalorder %s5509_s16, 1  ;;  %p88_p4 = scmp.ne.s32.totalorder %s5454_s13, %s5450_s12 }
   0x9   : > { %s5525_s21 = scalar_select %p23_p1, %s5458_s14, %s25_s19  }
   0xa   : > { %p34_p5 = por %p33_p2, %p32_p0  ;;  %p5529_p6 = por %p83_p3, %p32_p0 }
   0xb   : > { %p89_p7 = scmp.eq.s32.totalorder %s4086_s17, 1  ;;  %p4088_p9 = scmp.ge.s32.totalorder %s5462_s15, 2 }
   0xd   : > { %p5533_p8 = por %p89_p7, %p88_p4  ;;  %129 = sbr.rel (%p4088_p9) target bundleno = 77 (0x4d), region = 20 }
  0x12   : > { %132 = sbr.rel (!%p34_p5) target bundleno = 77 (0x4d), region = 24  ;;  %s134_s24 = sand.u32 (%p34_p5), 1, %s5458_s14  }
  0x13   : > { %s5317_s25 = smul.u32 (%p34_p5), 144, %s5462_s15 }
  0x14   : > { %s5316_s26 = smul.u32 (%p34_p5), 432, %s134_s24 }
  0x15   : > { %s5545_s29 = scalar_lea.vmem (%p34_p5), %s6235_s0, %s5317_s25 }
  0x16   : > { %v156_v0 = vld [vmem:[%s5545_s29] sm:$0xff] (%p34_p5)   ;;  %v160_v1 = vld [vmem:[%s5545_s29 + $0x8] sm:$0xff] (%p34_p5)   ;;  %v164_v2 = vld [vmem:[%s5545_s29 + $0x10] sm:$0xff] (%p34_p5)   ;;  %s5550_s30 = scalar_lea.vmem (%p34_p5), [#allocation3], %s5316_s26 }
  0x17   : > { %157 = vst [vmem:[%s5550_s30] sm:$0xff] %v156_v0   ;;  %v168_v3 = vld [vmem:[%s5545_s29 + $0x18] sm:$0xff]   ;;  %v172_v4 = vld [vmem:[%s5545_s29 + $0x20] sm:$0xff]   ;;  %v176_v5 = vld [vmem:[%s5545_s29 + $0x28] sm:$0xff]  }
  0x18   : > { %161 = vst [vmem:[%s5550_s30 + $0x8] sm:$0xff] %v160_v1   ;;  %v180_v6 = vld [vmem:[%s5545_s29 + $0x30] sm:$0xff]   ;;  %v184_v7 = vld [vmem:[%s5545_s29 + $0x38] sm:$0xff]   ;;  %v188_v8 = vld [vmem:[%s5545_s29 + $0x40] sm:$0xff]  }
  0x19   : > { %165 = vst [vmem:[%s5550_s30 + $0x10] sm:$0xff] %v164_v2   ;;  %v192_v9 = vld [vmem:[%s5545_s29 + $0x48] sm:$0xff]   ;;  %v196_v10 = vld [vmem:[%s5545_s29 + $0x50] sm:$0xff]   ;;  %v200_v11 = vld [vmem:[%s5545_s29 + $0x58] sm:$0xff]  }
  0x1a   : > { %169 = vst [vmem:[%s5550_s30 + $0x18] sm:$0xff] %v168_v3   ;;  %v204_v12 = vld [vmem:[%s5545_s29 + $0x60] sm:$0xff]   ;;  %v208_v13 = vld [vmem:[%s5545_s29 + $0x68] sm:$0xff]   ;;  %v212_v14 = vld [vmem:[%s5545_s29 + $0x70] sm:$0xff]  }
  0x1b   : > { %173 = vst [vmem:[%s5550_s30 + $0x20] sm:$0xff] %v172_v4   ;;  %v216_v15 = vld [vmem:[%s5545_s29 + $0x78] sm:$0xff]   ;;  %v220_v16 = vld [vmem:[%s5545_s29 + $0x80] sm:$0xff]   ;;  %v224_v17 = vld [vmem:[%s5545_s29 + $0x88] sm:$0xff]  }
  0x1c   : > { %177 = vst [vmem:[%s5550_s30 + $0x28] sm:$0xff] %v176_v5   ;;  %v228_v18 = vld [vmem:[%s5545_s29 + $0x120] sm:$0xff]   ;;  %v232_v19 = vld [vmem:[%s5545_s29 + $0x128] sm:$0xff]   ;;  %v236_v20 = vld [vmem:[%s5545_s29 + $0x130] sm:$0xff]  }
  0x1d   : > { %181 = vst [vmem:[%s5550_s30 + $0x30] sm:$0xff] %v180_v6   ;;  %v240_v21 = vld [vmem:[%s5545_s29 + $0x138] sm:$0xff]   ;;  %v244_v22 = vld [vmem:[%s5545_s29 + $0x140] sm:$0xff]   ;;  %v248_v23 = vld [vmem:[%s5545_s29 + $0x148] sm:$0xff]  }
  0x1e   : > { %185 = vst [vmem:[%s5550_s30 + $0x38] sm:$0xff] %v184_v7   ;;  %v252_v24 = vld [vmem:[%s5545_s29 + $0x150] sm:$0xff]   ;;  %v256_v25 = vld [vmem:[%s5545_s29 + $0x158] sm:$0xff]   ;;  %v260_v26 = vld [vmem:[%s5545_s29 + $0x160] sm:$0xff]  }
  0x1f   : > { %189 = vst [vmem:[%s5550_s30 + $0x40] sm:$0xff] %v188_v8   ;;  %v264_v27 = vld [vmem:[%s5545_s29 + $0x168] sm:$0xff]   ;;  %v268_v28 = vld [vmem:[%s5545_s29 + $0x170] sm:$0xff]   ;;  %v272_v29 = vld [vmem:[%s5545_s29 + $0x178] sm:$0xff]  }
  0x20   : > { %193 = vst [vmem:[%s5550_s30 + $0x48] sm:$0xff] %v192_v9   ;;  %v276_v30 = vld [vmem:[%s5545_s29 + $0x180] sm:$0xff]   ;;  %v280_v31 = vld [vmem:[%s5545_s29 + $0x188] sm:$0xff]   ;;  %v284_v32 = vld [vmem:[%s5545_s29 + $0x190] sm:$0xff]  }
  0x21   : > { %197 = vst [vmem:[%s5550_s30 + $0x50] sm:$0xff] %v196_v10   ;;  %v288_v33 = vld [vmem:[%s5545_s29 + $0x198] sm:$0xff]   ;;  %v292_v34 = vld [vmem:[%s5545_s29 + $0x1a0] sm:$0xff]   ;;  %v296_v35 = vld [vmem:[%s5545_s29 + $0x1a8] sm:$0xff]  }
  0x22   : > { %201 = vst [vmem:[%s5550_s30 + $0x58] sm:$0xff] %v200_v11   ;;  %v300_v36 = vld [vmem:[%s5545_s29 + $0x240] sm:$0xff]   ;;  %v304_v37 = vld [vmem:[%s5545_s29 + $0x248] sm:$0xff]   ;;  %v308_v38 = vld [vmem:[%s5545_s29 + $0x250] sm:$0xff]  }
  0x23   : > { %205 = vst [vmem:[%s5550_s30 + $0x60] sm:$0xff] %v204_v12   ;;  %v312_v39 = vld [vmem:[%s5545_s29 + $0x258] sm:$0xff]   ;;  %v316_v40 = vld [vmem:[%s5545_s29 + $0x260] sm:$0xff]   ;;  %v320_v41 = vld [vmem:[%s5545_s29 + $0x268] sm:$0xff]  }
  0x24   : > { %209 = vst [vmem:[%s5550_s30 + $0x68] sm:$0xff] %v208_v13   ;;  %v324_v42 = vld [vmem:[%s5545_s29 + $0x270] sm:$0xff]   ;;  %v328_v43 = vld [vmem:[%s5545_s29 + $0x278] sm:$0xff]   ;;  %v332_v44 = vld [vmem:[%s5545_s29 + $0x280] sm:$0xff]  }
  0x25   : > { %213 = vst [vmem:[%s5550_s30 + $0x70] sm:$0xff] %v212_v14   ;;  %v336_v45 = vld [vmem:[%s5545_s29 + $0x288] sm:$0xff]   ;;  %v340_v46 = vld [vmem:[%s5545_s29 + $0x290] sm:$0xff]   ;;  %v344_v47 = vld [vmem:[%s5545_s29 + $0x298] sm:$0xff]  }
  0x26   : > { %217 = vst [vmem:[%s5550_s30 + $0x78] sm:$0xff] %v216_v15   ;;  %v348_v48 = vld [vmem:[%s5545_s29 + $0x2a0] sm:$0xff]   ;;  %v352_v49 = vld [vmem:[%s5545_s29 + $0x2a8] sm:$0xff]   ;;  %v356_v50 = vld [vmem:[%s5545_s29 + $0x2b0] sm:$0xff]  }
  0x27   : > { %221 = vst [vmem:[%s5550_s30 + $0x80] sm:$0xff] %v220_v16   ;;  %v360_v51 = vld [vmem:[%s5545_s29 + $0x2b8] sm:$0xff]   ;;  %v364_v52 = vld [vmem:[%s5545_s29 + $0x2c0] sm:$0xff]   ;;  %v368_v53 = vld [vmem:[%s5545_s29 + $0x2c8] sm:$0xff]  }
  0x28   : > { %225 = vst [vmem:[%s5550_s30 + $0x88] sm:$0xff] %v224_v17  }
  0x29   : > { %229 = vst [vmem:[%s5550_s30 + $0x90] sm:$0xff] %v228_v18  }
  0x2a   : > { %233 = vst [vmem:[%s5550_s30 + $0x98] sm:$0xff] %v232_v19  }
  0x2b   : > { %237 = vst [vmem:[%s5550_s30 + $0xa0] sm:$0xff] %v236_v20  }
  0x2c   : > { %241 = vst [vmem:[%s5550_s30 + $0xa8] sm:$0xff] %v240_v21  }
  0x2d   : > { %245 = vst [vmem:[%s5550_s30 + $0xb0] sm:$0xff] %v244_v22  }
  0x2e   : > { %249 = vst [vmem:[%s5550_s30 + $0xb8] sm:$0xff] %v248_v23  }
  0x2f   : > { %253 = vst [vmem:[%s5550_s30 + $0xc0] sm:$0xff] %v252_v24  }
  0x30   : > { %257 = vst [vmem:[%s5550_s30 + $0xc8] sm:$0xff] %v256_v25  }
  0x31   : > { %261 = vst [vmem:[%s5550_s30 + $0xd0] sm:$0xff] %v260_v26  }
  0x32   : > { %265 = vst [vmem:[%s5550_s30 + $0xd8] sm:$0xff] %v264_v27  }
  0x33   : > { %269 = vst [vmem:[%s5550_s30 + $0xe0] sm:$0xff] %v268_v28  }
  0x34   : > { %273 = vst [vmem:[%s5550_s30 + $0xe8] sm:$0xff] %v272_v29  }
  0x35   : > { %277 = vst [vmem:[%s5550_s30 + $0xf0] sm:$0xff] %v276_v30  }
  0x36   : > { %281 = vst [vmem:[%s5550_s30 + $0xf8] sm:$0xff] %v280_v31  }
  0x37   : > { %285 = vst [vmem:[%s5550_s30 + $0x100] sm:$0xff] %v284_v32  }
  0x38   : > { %289 = vst [vmem:[%s5550_s30 + $0x108] sm:$0xff] %v288_v33  }
  0x39   : > { %293 = vst [vmem:[%s5550_s30 + $0x110] sm:$0xff] %v292_v34  }
  0x3a   : > { %297 = vst [vmem:[%s5550_s30 + $0x118] sm:$0xff] %v296_v35  }
  0x3b   : > { %301 = vst [vmem:[%s5550_s30 + $0x120] sm:$0xff] %v300_v36  }
  0x3c   : > { %305 = vst [vmem:[%s5550_s30 + $0x128] sm:$0xff] %v304_v37  }
  0x3d   : > { %309 = vst [vmem:[%s5550_s30 + $0x130] sm:$0xff] %v308_v38  }
  0x3e   : > { %313 = vst [vmem:[%s5550_s30 + $0x138] sm:$0xff] %v312_v39  }
  0x3f   : > { %317 = vst [vmem:[%s5550_s30 + $0x140] sm:$0xff] %v316_v40  }
  0x40   : > { %321 = vst [vmem:[%s5550_s30 + $0x148] sm:$0xff] %v320_v41  }
  0x41   : > { %325 = vst [vmem:[%s5550_s30 + $0x150] sm:$0xff] %v324_v42  }
  0x42   : > { %329 = vst [vmem:[%s5550_s30 + $0x158] sm:$0xff] %v328_v43  }
  0x43   : > { %333 = vst [vmem:[%s5550_s30 + $0x160] sm:$0xff] %v332_v44  }
  0x44   : > { %337 = vst [vmem:[%s5550_s30 + $0x168] sm:$0xff] %v336_v45  }
  0x45   : > { %341 = vst [vmem:[%s5550_s30 + $0x170] sm:$0xff] %v340_v46  }
  0x46   : > { %345 = vst [vmem:[%s5550_s30 + $0x178] sm:$0xff] %v344_v47  }
  0x47   : > { %349 = vst [vmem:[%s5550_s30 + $0x180] sm:$0xff] %v348_v48  }
  0x48   : > { %353 = vst [vmem:[%s5550_s30 + $0x188] sm:$0xff] %v352_v49  }
  0x49   : > { %357 = vst [vmem:[%s5550_s30 + $0x190] sm:$0xff] %v356_v50  }
  0x4a   : > { %361 = vst [vmem:[%s5550_s30 + $0x198] sm:$0xff] %v360_v51  }
  0x4b   : > { %365 = vst [vmem:[%s5550_s30 + $0x1a0] sm:$0xff] %v364_v52  }
  0x4c   : > { %369 = vst [vmem:[%s5550_s30 + $0x1a8] sm:$0xff] %v368_v53  }
  0x4d PF: > { %p4090_p10 = scmp.ge.s32.totalorder %s5462_s15, 1  ;;  %p610_p11 = scmp.lt.s32.totalorder %s5462_s15, 3 }
  0x4f   : > { %p611_p12 = pnand %p4090_p10, %p610_p11 }
  0x50   : > { %s5660_s4 = sand.u32 (!%p611_p12), 1, %s5454_s13   ;;  %p4092_p13 = scmp.ne.s32.totalorder (!%p611_p12), %s5509_s16, 0 }
  0x51   : > { %614 = sbr.rel (%p611_p12) target bundleno = 826 (0x33a), region = 65  ;;  %s4091_s6 = sshll.u32 (!%p611_p12), %s5660_s4, 7 }
  0x52   : > { %s5318_s5 = smul.u32 (!%p611_p12), 432, %s5660_s4  ;;  %s5666_s8 = scalar_lea.vmem (!%p611_p12), [#allocation4], %s4091_s6 }
  0x54   : > { %s5664_s7 = scalar_lea.vmem (!%p611_p12), [#allocation3], %s5318_s5 }
  0x56   : > { %645 = sbr.rel (%p4092_p13) target bundleno = 93 (0x5d), region = 73 }
  0x5b   : > { %v5464_v54 = vmov 0.0  }
  0x5c   : > { %646 = vst [vmem:[#allocation6] sm:$0x3] %v5464_v54 }
  0x5d PF: > { %v5080_v55 = vld [vmem:[%s6236_s1] sm:$0xff]  ;;  %v5114_v58 = vld [vmem:[%s6236_s1 + $0x10] sm:$0xff]  ;;  %vm767_vm0 = vcmask 130048   ;;  %v5131_v61 = vld [vmem:[%s6236_s1 + $0x18] sm:$0xff]  ;;  %s3991_s24 = sshll.u32 %s5666_s8, 4  ;;  %s3979_s26 = scalar_lea.sflag [#allocation5], %s5660_s4  ;;  %s3992_s24 = int_to_ptr.vmem [resolvable:$true] %s3991_s24 }
  0x5e   : > { %v5068_v56 = vld [vmem:[%s5664_s7 + $0x20] sm:$0xff]  ;;  %5313 = vmatpush.bf16.msra.mxu1 %v5080_v55  ;;  %5314 = vmatpush.bf16.msra.mxu2 %v5080_v55  ;;  %v5097_v62 = vld [vmem:[%s6236_s1 + $0x8] sm:$0xff]  ;;  %v5070_v4 = vld [vmem:[%s5664_s7 + $0x30] sm:$0xff]  ;;  %s5388_s5 = scalar_lea.hbm %s6237_s2, 256 }
  0x5f   : > { %v5072_v57 = vld [vmem:[%s5664_s7 + $0x40] sm:$0xff]  ;;  %5315 = vmatpush.bf16.msra.mxu3 %v5080_v55  ;;  %823 = vmatpush.bf16.msra.mxu0 %v5080_v55  ;;  %v5069_v0 = vld [vmem:[%s5664_s7 + $0x28] sm:$0xff]  ;;  %v5074_v5 = vld [vmem:[%s5664_s7 + $0x50] sm:$0xff] }
  0x60   : > { %v5076_v59 = vld [vmem:[%s5664_s7 + $0x60] sm:$0xff]  ;;  %v5073_v1 = vld [vmem:[%s5664_s7 + $0x48] sm:$0xff]  ;;  %v5078_v6 = vld [vmem:[%s5664_s7 + $0x70] sm:$0xff] }
  0x61   : > { %v5064_v60 = vld [vmem:[%s5664_s7] sm:$0xff]  ;;  %4165 = vmatmul.msk.bf16.vlgmr.msra.gmra.mxu1 %vm767_vm0, %v5068_v56  ;;  %4169 = vmatmul.msk.bf16.vlgmr.msra.gmra.mxu2 %vm767_vm0, %v5072_v57  ;;  %v5077_v2 = vld [vmem:[%s5664_s7 + $0x68] sm:$0xff]  ;;  %v5066_v7 = vld [vmem:[%s5664_s7 + $0x10] sm:$0xff] }
  0x62   : > { %v5148_v63 = vld [vmem:[%s6236_s1 + $0x20] sm:$0xff]  ;;  %1469 = vmatpush.bf16.msrb.mxu2 %v5114_v58  ;;  %4173 = vmatmul.msk.bf16.vlgmr.msra.gmra.mxu3 %vm767_vm0, %v5076_v59  ;;  %v5065_v3 = vld [vmem:[%s5664_s7 + $0x8] sm:$0xff]  ;;  %v5182_v8 = vld [vmem:[%s6236_s1 + $0x30] sm:$0xff] }
  0x63   : > { %1823 = vmatpush.bf16.msrb.mxu3 %v5131_v61  ;;  %4161 = vmatmul.msk.bf16.vlgmr.msra.gmra.mxu0 %vm767_vm0, %v5064_v60  ;;  %v5199_v9 = vld [vmem:[%s6236_s1 + $0x38] sm:$0xff]  ;;  %v5165_v10 = vld [vmem:[%s6236_s1 + $0x28] sm:$0xff]  ;;  %v5216_v11 = vld [vmem:[%s6236_s1 + $0x40] sm:$0xff] }
  0x64   : > { %1114 = vmatpush.bf16.msrb.mxu1 %v5097_v62  ;;  %2177 = vmatpush.bf16.msrb.mxu0 %v5148_v63  ;;  %v5071_v12 = vld [vmem:[%s5664_s7 + $0x38] sm:$0xff]  ;;  %v5081_v16 = vld [vmem:[%s5664_s7 + $0x90] sm:$0xff]  ;;  %v5098_v17 = vld [vmem:[%s5664_s7 + $0x120] sm:$0xff] }
  0x65   : > { %v5075_v13 = vld [vmem:[%s5664_s7 + $0x58] sm:$0xff]  ;;  %v5115_v18 = vld [vmem:[%s5664_s7 + $0x8] sm:$0xff]  ;;  %v5116_v22 = vld [vmem:[%s5664_s7 + $0x10] sm:$0xff] }
  0x66   : > { %2885 = vmatpush.bf16.msra.mxu2 %v5182_v8  ;;  %v5079_v14 = vld [vmem:[%s5664_s7 + $0x78] sm:$0xff]  ;;  %v5099_v21 = vld [vmem:[%s5664_s7 + $0x128] sm:$0xff]  ;;  %v5133_v23 = vld [vmem:[%s5664_s7 + $0xa0] sm:$0xff] }
  0x67   : > { %3239 = vmatpush.bf16.msra.mxu3 %v5199_v9  ;;  %v5067_v15 = vld [vmem:[%s5664_s7 + $0x18] sm:$0xff]  ;;  %v5083_v24 = vld [vmem:[%s5664_s7 + $0xa0] sm:$0xff]  ;;  %v5100_v25 = vld [vmem:[%s5664_s7 + $0x130] sm:$0xff] }
  0x68   : > { %2531 = vmatpush.bf16.msra.mxu1 %v5165_v10  ;;  %3593 = vmatpush.bf16.msra.mxu0 %v5216_v11  ;;  %v5132_v19 = vld [vmem:[%s5664_s7 + $0x98] sm:$0xff]  ;;  %v5134_v27 = vld [vmem:[%s5664_s7 + $0xa8] sm:$0xff]  ;;  %v5118_v30 = vld [vmem:[%s5664_s7 + $0x20] sm:$0xff] }
  0x69   : > { %v5082_v20 = vld [vmem:[%s5664_s7 + $0x98] sm:$0xff]  ;;  %v5084_v28 = vld [vmem:[%s5664_s7 + $0xa8] sm:$0xff]  ;;  %v5135_v31 = vld [vmem:[%s5664_s7 + $0xb0] sm:$0xff] }
  0x6a   : > { %v5117_v26 = vld [vmem:[%s5664_s7 + $0x18] sm:$0xff]  ;;  %v5085_v32 = vld [vmem:[%s5664_s7 + $0xb0] sm:$0xff]  ;;  %v5102_v33 = vld [vmem:[%s5664_s7 + $0x140] sm:$0xff] }
  0x6b   : > { %v5101_v29 = vld [vmem:[%s5664_s7 + $0x138] sm:$0xff]  ;;  %v5119_v35 = vld [vmem:[%s5664_s7 + $0x28] sm:$0xff]  ;;  %v5120_v47 = vld [vmem:[%s5664_s7 + $0x30] sm:$0xff] }
  0x6c   : > { %v5136_v36 = vld [vmem:[%s5664_s7 + $0xb8] sm:$0xff]  ;;  %v5103_v45 = vld [vmem:[%s5664_s7 + $0x148] sm:$0xff]  ;;  %v5137_v48 = vld [vmem:[%s5664_s7 + $0xc0] sm:$0xff] }
  0x6d   : > { %v5086_v44 = vld [vmem:[%s5664_s7 + $0xb8] sm:$0xff]  ;;  %v5087_v56 = vld [vmem:[%s5664_s7 + $0xc0] sm:$0xff]  ;;  %v5104_v57 = vld [vmem:[%s5664_s7 + $0x150] sm:$0xff] }
  0x6e   : > { %v5121_v59 = vld [vmem:[%s5664_s7 + $0x38] sm:$0xff]  ;;  %v5138_v60 = vld [vmem:[%s5664_s7 + $0xc8] sm:$0xff]  ;;  %v5139_v8 = vld [vmem:[%s5664_s7 + $0xd0] sm:$0xff] }
  0x71   : > { %4166 = vmatmul.msk.bf16.gmra.mxu1 %vm767_vm0, %v5069_v0  ;;  %4170 = vmatmul.msk.bf16.gmra.mxu2 %vm767_vm0, %v5073_v1 }
  0x72   : > { %4174 = vmatmul.msk.bf16.gmra.mxu3 %vm767_vm0, %v5077_v2 }
  0x73   : > { %4162 = vmatmul.msk.bf16.gmra.mxu0 %vm767_vm0, %v5065_v3 }
  0x81   : > { %4167 = vmatmul.msk.bf16.gmra.mxu1 %vm767_vm0, %v5070_v4  ;;  %4171 = vmatmul.msk.bf16.gmra.mxu2 %vm767_vm0, %v5074_v5  ;;  %v5088_v4 = vld [vmem:[%s5664_s7 + $0xc8] sm:$0xff]  ;;  %v5105_v5 = vld [vmem:[%s5664_s7 + $0x158] sm:$0xff] }
  0x82   : > { %4175 = vmatmul.msk.bf16.gmra.mxu3 %vm767_vm0, %v5078_v6 }
  0x83   : > { %4163 = vmatmul.msk.bf16.gmra.mxu0 %vm767_vm0, %v5066_v7  ;;  %v5122_v7 = vld [vmem:[%s5664_s7 + $0x40] sm:$0xff] }
  0x91   : > { %4168 = vmatmul.msk.bf16.gmra.mxu1 %vm767_vm0, %v5071_v12  ;;  %4172 = vmatmul.msk.bf16.gmra.mxu2 %vm767_vm0, %v5075_v13 }
  0x92   : > { %4176 = vmatmul.msk.bf16.gmra.mxu3 %vm767_vm0, %v5079_v14 }
  0x93   : > { %4164 = vmatmul.msk.bf16.gmra.mxu0 %vm767_vm0, %v5067_v15 }
  0xa1   : > { %4279 = vmatmul.msk.bf16.vlgmr.msrb.gmra.mxu1 %vm767_vm0, %v5081_v16  ;;  %4397 = vmatmul.msk.bf16.vlgmr.msrb.gmra.mxu2 %vm767_vm0, %v5098_v17  ;;  %v5089_v16 = vld [vmem:[%s5664_s7 + $0xd0] sm:$0xff]  ;;  %v5106_v17 = vld [vmem:[%s5664_s7 + $0x160] sm:$0xff] }
  0xa2   : > { %4483 = vmatmul.msk.bf16.vlgmr.msrb.gmra.mxu3 %vm767_vm0, %v5115_v18 }
  0xa3   : > { %4601 = vmatmul.msk.bf16.vlgmr.msrb.gmra.mxu0 %vm767_vm0, %v5132_v19  ;;  %v5123_v19 = vld [vmem:[%s5664_s7 + $0x48] sm:$0xff] }
  0xb1   : > { %4280 = vmatmul.msk.bf16.gmra.mxu1 %vm767_vm0, %v5082_v20  ;;  %4398 = vmatmul.msk.bf16.gmra.mxu2 %vm767_vm0, %v5099_v21  ;;  %v5140_v20 = vld [vmem:[%s5664_s7 + $0xd8] sm:$0xff] }
  0xb2   : > { %4484 = vmatmul.msk.bf16.gmra.mxu3 %vm767_vm0, %v5116_v22 }
  0xb3   : > { %4602 = vmatmul.msk.bf16.gmra.mxu0 %vm767_vm0, %v5133_v23 }
  0xc1   : > { %4281 = vmatmul.msk.bf16.gmra.mxu1 %vm767_vm0, %v5083_v24  ;;  %4399 = vmatmul.msk.bf16.gmra.mxu2 %vm767_vm0, %v5100_v25 }
  0xc2   : > { %4485 = vmatmul.msk.bf16.gmra.mxu3 %vm767_vm0, %v5117_v26 }
  0xc3   : > { %4603 = vmatmul.msk.bf16.gmra.mxu0 %vm767_vm0, %v5134_v27 }
  0xd1   : > { %4282 = vmatmul.msk.bf16.gmra.mxu1 %vm767_vm0, %v5084_v28  ;;  %4400 = vmatmul.msk.bf16.gmra.mxu2 %vm767_vm0, %v5101_v29 }
  0xd2   : > { %4486 = vmatmul.msk.bf16.gmra.mxu3 %vm767_vm0, %v5118_v30 }
  0xd3   : > { %4604 = vmatmul.msk.bf16.gmra.mxu0 %vm767_vm0, %v5135_v31 }
  0xde   : > { %v5762_v34 = vpop.f32.mrf.mxu1 }
  0xe0   : > { %v5766_v37 = vpop.f32.mrf.mxu0 }
  0xe1   : > { %4283 = vmatmul.msk.bf16.gmra.mxu1 %vm767_vm0, %v5085_v32  ;;  %4401 = vmatmul.msk.bf16.gmra.mxu2 %vm767_vm0, %v5102_v33 }
  0xe2   : > { %4487 = vmatmul.msk.bf16.gmra.mxu3 %vm767_vm0, %v5119_v35  ;;  %v5090_v35 = vld [vmem:[%s5664_s7 + $0xd8] sm:$0xff] }
  0xe3   : > { %4605 = vmatmul.msk.bf16.gmra.mxu0 %vm767_vm0, %v5136_v36  ;;  %v5107_v36 = vld [vmem:[%s5664_s7 + $0x168] sm:$0xff] }
  0xe4   : > { %v5772_v38 = vpop.f32.mrf.mxu2 }
  0xe5   : > { %v5774_v39 = vpop.f32.mrf.mxu3 }
  0xe6   : > { %v5776_v40 = vpop.f32.mrf.mxu1 }
  0xe8   : > { %v5778_v41 = vpop.f32.mrf.mxu0 }
  0xec   : > { %v5780_v42 = vpop.f32.mrf.mxu2 }
  0xed   : > { %v5782_v43 = vpop.f32.mrf.mxu3 }
  0xee   : > { %v5786_v46 = vpop.f32.mrf.mxu1 }
  0xf0   : > { %v5790_v49 = vpop.f32.mrf.mxu0 }
  0xf1   : > { %4284 = vmatmul.msk.bf16.gmra.mxu1 %vm767_vm0, %v5086_v44  ;;  %4402 = vmatmul.msk.bf16.gmra.mxu2 %vm767_vm0, %v5103_v45  ;;  %v5124_v44 = vld [vmem:[%s5664_s7 + $0x50] sm:$0xff]  ;;  %v5141_v45 = vld [vmem:[%s5664_s7 + $0xe0] sm:$0xff] }
  0xf2   : > { %4488 = vmatmul.msk.bf16.gmra.mxu3 %vm767_vm0, %v5120_v47 }
  0xf3   : > { %4606 = vmatmul.msk.bf16.gmra.mxu0 %vm767_vm0, %v5137_v48 }
  0xf4   : > { %v5796_v50 = vpop.f32.mrf.mxu2 }
  0xf5   : > { %v5798_v51 = vpop.f32.mrf.mxu3 }
  0xf6   : > { %v5800_v52 = vpop.f32.mrf.mxu1 }
  0xf8   : > { %v5802_v53 = vpop.f32.mrf.mxu0 }
  0xfc   : > { %v5804_v54 = vpop.f32.mrf.mxu2 }
  0xfd   : > { %v5806_v55 = vpop.f32.mrf.mxu3 }
  0xfe   : > { %v5810_v58 = vpop.f32.mrf.mxu1 }
 0x100   : > { %v5814_v61 = vpop.f32.mrf.mxu0 }
 0x101   : > { %4285 = vmatmul.msk.bf16.gmra.mxu1 %vm767_vm0, %v5087_v56  ;;  %4403 = vmatmul.msk.bf16.gmra.mxu2 %vm767_vm0, %v5104_v57 }
 0x102   : > { %4489 = vmatmul.msk.bf16.gmra.mxu3 %vm767_vm0, %v5121_v59 }
 0x103   : > { %4607 = vmatmul.msk.bf16.gmra.mxu0 %vm767_vm0, %v5138_v60 }
 0x104   : > { %v5820_v62 = vpop.f32.mrf.mxu2 }
 0x105   : > { %v5822_v63 = vpop.f32.mrf.mxu3 }
 0x106   : > { %v5824_v0 = vpop.f32.mrf.mxu1 }
 0x108   : > { %v5826_v1 = vpop.f32.mrf.mxu0 }
 0x10c   : > { %v5828_v2 = vpop.f32.mrf.mxu2 }
 0x10d   : > { %v5830_v3 = vpop.f32.mrf.mxu3 }
 0x10e   : > { %v5834_v6 = vpop.f32.mrf.mxu1 }
 0x110   : > { %v5838_v9 = vpop.f32.mrf.mxu0 }
 0x111   : > { %4286 = vmatmul.msk.bf16.gmra.mxu1 %vm767_vm0, %v5088_v4  ;;  %4404 = vmatmul.msk.bf16.gmra.mxu2 %vm767_vm0, %v5105_v5 }
 0x112   : > { %4490 = vmatmul.msk.bf16.gmra.mxu3 %vm767_vm0, %v5122_v7 }
 0x113   : > { %4608 = vmatmul.msk.bf16.gmra.mxu0 %vm767_vm0, %v5139_v8 }
 0x114   : > { %v5844_v10 = vpop.f32.mrf.mxu2 }
 0x115   : > { %v5846_v11 = vpop.f32.mrf.mxu3 }
 0x116   : > { %v5848_v12 = vpop.f32.mrf.mxu1 }
 0x118   : > { %v5850_v13 = vpop.f32.mrf.mxu0 }
 0x11c   : > { %v5852_v14 = vpop.f32.mrf.mxu2 }
 0x11d   : > { %v5854_v15 = vpop.f32.mrf.mxu3 }
 0x11e   : > { %v1116_v18 = vpop.f32.mrf.mxu1 }
 0x11f   : > { %v1228_v21 = vadd.f32 %v1116_v18, %v5766_v37 }
 0x120   : > { %v2179_v22 = vpop.f32.mrf.mxu0 }
 0x121   : > { %4287 = vmatmul.msk.bf16.gmra.mxu1 %vm767_vm0, %v5089_v16  ;;  %4405 = vmatmul.msk.bf16.gmra.mxu2 %vm767_vm0, %v5106_v17 }
 0x122   : > { %4491 = vmatmul.msk.bf16.gmra.mxu3 %vm767_vm0, %v5123_v19  ;;  %v5091_v19 = vld [vmem:[%s5664_s7 + $0xe0] sm:$0xff] }
 0x123   : > { %4609 = vmatmul.msk.bf16.gmra.mxu0 %vm767_vm0, %v5140_v20  ;;  %v5108_v20 = vld [vmem:[%s5664_s7 + $0x170] sm:$0xff] }
 0x124   : > { %v1471_v23 = vpop.f32.mrf.mxu2 }
 0x125   : > { %v1583_v24 = vadd.f32 %v1471_v23, %v1228_v21  ;;  %v1825_v25 = vpop.f32.mrf.mxu3  ;;  %v5142_v23 = vld [vmem:[%s5664_s7 + $0xe8] sm:$0xff] }
 0x126   : > { %v1118_v26 = vpop.f32.mrf.mxu1 }
 0x127   : > { %v1937_v27 = vadd.f32 %v1825_v25, %v1583_v24  ;;  %v1229_v28 = vadd.f32 %v1118_v26, %v5778_v41 }
 0x128   : > { %v2181_v29 = vpop.f32.mrf.mxu0 }
 0x129   : > { %v5866_v30 = vadd.f32 %v2179_v22, %v1937_v27  ;;  %v5125_v22 = vld [vmem:[%s5664_s7 + $0x58] sm:$0xff] }
 0x12c   : > { %v1473_v31 = vpop.f32.mrf.mxu2 }
 0x12d   : > { %v1584_v32 = vadd.f32 %v1473_v31, %v1229_v28  ;;  %v1827_v33 = vpop.f32.mrf.mxu3 }
 0x12e   : > { %v1121_v37 = vpop.f32.mrf.mxu1 }
 0x12f   : > { %v1938_v47 = vadd.f32 %v1827_v33, %v1584_v32  ;;  %v1230_v48 = vadd.f32 %v1121_v37, %v5790_v49 }
 0x130   : > { %v2184_v56 = vpop.f32.mrf.mxu0 }
 0x131   : > { %4288 = vmatmul.msk.bf16.gmra.mxu1 %vm767_vm0, %v5090_v35  ;;  %4406 = vmatmul.msk.bf16.gmra.mxu2 %vm767_vm0, %v5107_v36  ;;  %v5875_v41 = vadd.f32 %v2181_v29, %v1938_v47  ;;  %v5109_v47 = vld [vmem:[%s5664_s7 + $0x178] sm:$0xff] }
 0x132   : > { %4492 = vmatmul.msk.bf16.gmra.mxu3 %vm767_vm0, %v5124_v44 }
 0x133   : > { %4610 = vmatmul.msk.bf16.gmra.mxu0 %vm767_vm0, %v5141_v45  ;;  %v5092_v45 = vld [vmem:[%s5664_s7 + $0xe8] sm:$0xff] }
 0x134   : > { %v1476_v57 = vpop.f32.mrf.mxu2 }
 0x135   : > { %v1585_v59 = vadd.f32 %v1476_v57, %v1230_v48  ;;  %v1830_v60 = vpop.f32.mrf.mxu3  ;;  %v5143_v57 = vld [vmem:[%s5664_s7 + $0xf0] sm:$0xff] }
 0x136   : > { %v1123_v4 = vpop.f32.mrf.mxu1 }
 0x137   : > { %v1939_v49 = vadd.f32 %v1830_v60, %v1585_v59  ;;  %v1231_v5 = vadd.f32 %v1123_v4, %v5802_v53 }
 0x138   : > { %v2186_v7 = vpop.f32.mrf.mxu0 }
 0x139   : > { %v5880_v8 = vadd.f32 %v2184_v56, %v1939_v49  ;;  %v5126_v56 = vld [vmem:[%s5664_s7 + $0x60] sm:$0xff] }
 0x13c   : > { %v1478_v16 = vpop.f32.mrf.mxu2 }
 0x13d   : > { %v1586_v17 = vadd.f32 %v1478_v16, %v1231_v5  ;;  %v1832_v18 = vpop.f32.mrf.mxu3 }
 0x13e   : > { %v1126_v21 = vpop.f32.mrf.mxu1 }
 0x13f   : > { %v1940_v24 = vadd.f32 %v1832_v18, %v1586_v17  ;;  %v1232_v25 = vadd.f32 %v1126_v21, %v5814_v61 }
 0x140   : > { %v2189_v26 = vpop.f32.mrf.mxu0 }
 0x141   : > { %4289 = vmatmul.msk.bf16.gmra.mxu1 %vm767_vm0, %v5091_v19  ;;  %4407 = vmatmul.msk.bf16.gmra.mxu2 %vm767_vm0, %v5108_v20  ;;  %v5889_v53 = vadd.f32 %v2186_v7, %v1940_v24  ;;  %v5110_v24 = vld [vmem:[%s5664_s7 + $0x180] sm:$0xff] }
 0x142   : > { %4493 = vmatmul.msk.bf16.gmra.mxu3 %vm767_vm0, %v5125_v22 }
 0x143   : > { %4611 = vmatmul.msk.bf16.gmra.mxu0 %vm767_vm0, %v5142_v23  ;;  %v5093_v23 = vld [vmem:[%s5664_s7 + $0xf0] sm:$0xff] }
 0x144   : > { %v1481_v27 = vpop.f32.mrf.mxu2 }
 0x145   : > { %v1587_v28 = vadd.f32 %v1481_v27, %v1232_v25  ;;  %v1835_v29 = vpop.f32.mrf.mxu3  ;;  %v5144_v27 = vld [vmem:[%s5664_s7 + $0xf8] sm:$0xff] }
 0x146   : > { %v1128_v31 = vpop.f32.mrf.mxu1 }
 0x147   : > { %v1941_v61 = vadd.f32 %v1835_v29, %v1587_v28  ;;  %v1233_v32 = vadd.f32 %v1128_v31, %v5826_v1 }
 0x148   : > { %v2191_v33 = vpop.f32.mrf.mxu0 }
 0x149   : > { %v5894_v35 = vadd.f32 %v2189_v26, %v1941_v61  ;;  %v5127_v26 = vld [vmem:[%s5664_s7 + $0x68] sm:$0xff] }
 0x14c   : > { %v1483_v36 = vpop.f32.mrf.mxu2 }
 0x14d   : > { %v1588_v37 = vadd.f32 %v1483_v36, %v1233_v32  ;;  %v1837_v44 = vpop.f32.mrf.mxu3 }
 0x14e   : > { %v1131_v48 = vpop.f32.mrf.mxu1 }
 0x14f   : > { %v1942_v59 = vadd.f32 %v1837_v44, %v1588_v37  ;;  %v1234_v60 = vadd.f32 %v1131_v48, %v5838_v9 }
 0x150   : > { %v2194_v4 = vpop.f32.mrf.mxu0 }
 0x151   : > { %4290 = vmatmul.msk.bf16.gmra.mxu1 %vm767_vm0, %v5092_v45  ;;  %4408 = vmatmul.msk.bf16.gmra.mxu2 %vm767_vm0, %v5109_v47  ;;  %v5903_v1 = vadd.f32 %v2191_v33, %v1942_v59  ;;  %v5094_v59 = vld [vmem:[%s5664_s7 + $0xf8] sm:$0xff] }
 0x152   : > { %4494 = vmatmul.msk.bf16.gmra.mxu3 %vm767_vm0, %v5126_v56 }
 0x153   : > { %4612 = vmatmul.msk.bf16.gmra.mxu0 %vm767_vm0, %v5143_v57 }
 0x154   : > { %v1486_v49 = vpop.f32.mrf.mxu2 }
 0x155   : > { %v1589_v5 = vadd.f32 %v1486_v49, %v1234_v60  ;;  %v1840_v7 = vpop.f32.mrf.mxu3  ;;  %v5111_v60 = vld [vmem:[%s5664_s7 + $0x188] sm:$0xff]  ;;  %v5128_v49 = vld [vmem:[%s5664_s7 + $0x70] sm:$0xff] }
 0x156   : > { %v1133_v16 = vpop.f32.mrf.mxu1 }
 0x157   : > { %v1943_v9 = vadd.f32 %v1840_v7, %v1589_v5  ;;  %v1235_v17 = vadd.f32 %v1133_v16, %v5850_v13  ;;  %v5145_v5 = vld [vmem:[%s5664_s7 + $0x100] sm:$0xff] }
 0x158   : > { %v2196_v18 = vpop.f32.mrf.mxu0 }
 0x159   : > { %v5908_v19 = vadd.f32 %v2194_v4, %v1943_v9 }
 0x15c   : > { %v1488_v20 = vpop.f32.mrf.mxu2 }
 0x15d   : > { %v1590_v21 = vadd.f32 %v1488_v20, %v1235_v17  ;;  %v1842_v22 = vpop.f32.mrf.mxu3 }
 0x15e   : > { %v1136_v25 = vpop.f32.mrf.mxu1 }
 0x15f   : > { %v1944_v28 = vadd.f32 %v1842_v22, %v1590_v21  ;;  %v1236_v13 = vadd.f32 %v1136_v25, %v5762_v34 }
 0x160   : > { %v2199_v29 = vpop.f32.mrf.mxu0 }
 0x161   : > { %4291 = vmatmul.msk.bf16.gmra.mxu1 %vm767_vm0, %v5093_v23  ;;  %4409 = vmatmul.msk.bf16.gmra.mxu2 %vm767_vm0, %v5110_v24  ;;  %v5916_v31 = vadd.f32 %v2196_v18, %v1944_v28  ;;  %v5095_v28 = vld [vmem:[%s5664_s7 + $0x100] sm:$0xff] }
 0x162   : > { %4495 = vmatmul.msk.bf16.gmra.mxu3 %vm767_vm0, %v5127_v26 }
 0x163   : > { %4613 = vmatmul.msk.bf16.gmra.mxu0 %vm767_vm0, %v5144_v27 }
 0x164   : > { %v1491_v61 = vpop.f32.mrf.mxu2 }
 0x165   : > { %v1591_v32 = vadd.f32 %v1491_v61, %v1236_v13  ;;  %v1845_v33 = vpop.f32.mrf.mxu3  ;;  %v5129_v61 = vld [vmem:[%s5664_s7 + $0x78] sm:$0xff] }
 0x166   : > { %v1138_v36 = vpop.f32.mrf.mxu1 }
 0x167   : > { %v1945_v37 = vadd.f32 %v1845_v33, %v1591_v32  ;;  %v1237_v47 = vadd.f32 %v1138_v36, %v5776_v40  ;;  %v5146_v32 = vld [vmem:[%s5664_s7 + $0x108] sm:$0xff] }
 0x168   : > { %v2201_v44 = vpop.f32.mrf.mxu0 }
 0x169   : > { %v5921_v45 = vadd.f32 %v2199_v29, %v1945_v37  ;;  %v5112_v29 = vld [vmem:[%s5664_s7 + $0x190] sm:$0xff] }
 0x16c   : > { %v1493_v48 = vpop.f32.mrf.mxu2 }
 0x16d   : > { %v1592_v56 = vadd.f32 %v1493_v48, %v1237_v47  ;;  %v1847_v57 = vpop.f32.mrf.mxu3 }
 0x16e   : > { %v1141_v4 = vpop.f32.mrf.mxu1 }
 0x16f   : > { %v1946_v34 = vadd.f32 %v1847_v57, %v1592_v56  ;;  %v1238_v40 = vadd.f32 %v1141_v4, %v5786_v46 }
 0x170   : > { %v2204_v7 = vpop.f32.mrf.mxu0 }
 0x171   : > { %4292 = vmatmul.msk.bf16.gmra.mxu1 %vm767_vm0, %v5094_v59  ;;  %4410 = vmatmul.msk.bf16.gmra.mxu2 %vm767_vm0, %v5111_v60  ;;  %v5930_v16 = vadd.f32 %v2201_v44, %v1946_v34  ;;  %v5096_v34 = vld [vmem:[%s5664_s7 + $0x108] sm:$0xff] }
 0x172   : > { %4496 = vmatmul.msk.bf16.gmra.mxu3 %vm767_vm0, %v5128_v49 }
 0x173   : > { %4614 = vmatmul.msk.bf16.gmra.mxu0 %vm767_vm0, %v5145_v5 }
 0x174   : > { %v1496_v9 = vpop.f32.mrf.mxu2 }
 0x175   : > { %v1593_v17 = vadd.f32 %v1496_v9, %v1238_v40  ;;  %v1850_v18 = vpop.f32.mrf.mxu3  ;;  %v5130_v9 = vld [vmem:[%s5664_s7 + $0x80] sm:$0xff] }
 0x176   : > { %v1143_v20 = vpop.f32.mrf.mxu1 }
 0x177   : > { %v1947_v21 = vadd.f32 %v1850_v18, %v1593_v17  ;;  %v1239_v24 = vadd.f32 %v1143_v20, %v5800_v52  ;;  %v5147_v17 = vld [vmem:[%s5664_s7 + $0x110] sm:$0xff] }
 0x178   : > { %v2206_v22 = vpop.f32.mrf.mxu0 }
 0x179   : > { %v5935_v23 = vadd.f32 %v2204_v7, %v1947_v21  ;;  %v5113_v7 = vld [vmem:[%s5664_s7 + $0x198] sm:$0xff] }
 0x17c   : > { %v1498_v25 = vpop.f32.mrf.mxu2 }
 0x17d   : > { %v1594_v26 = vadd.f32 %v1498_v25, %v1239_v24  ;;  %v1852_v27 = vpop.f32.mrf.mxu3 }
 0x17e   : > { %v1146_v13 = vpop.f32.mrf.mxu1 }
 0x17f   : > { %v1948_v46 = vadd.f32 %v1852_v27, %v1594_v26  ;;  %v1240_v52 = vadd.f32 %v1146_v13, %v5810_v58 }
 0x180   : > { %v2209_v33 = vpop.f32.mrf.mxu0 }
 0x181   : > { %4293 = vmatmul.msk.bf16.gmra.mxu1 %vm767_vm0, %v5095_v28  ;;  %4411 = vmatmul.msk.bf16.gmra.mxu2 %vm767_vm0, %v5112_v29  ;;  %v5944_v36 = vadd.f32 %v2206_v22, %v1948_v46  ;;  %v5149_v46 = vld [vmem:[%s5664_s7 + $0x128] sm:$0xff] }
 0x182   : > { %4497 = vmatmul.msk.bf16.gmra.mxu3 %vm767_vm0, %v5129_v61 }
 0x183   : > { %4615 = vmatmul.msk.bf16.gmra.mxu0 %vm767_vm0, %v5146_v32 }
 0x184   : > { %v1501_v37 = vpop.f32.mrf.mxu2 }
 0x185   : > { %v1595_v44 = vadd.f32 %v1501_v37, %v1240_v52  ;;  %v1855_v47 = vpop.f32.mrf.mxu3  ;;  %v5183_v37 = vld [vmem:[%s5664_s7 + $0xa0] sm:$0xff] }
 0x186   : > { %v1148_v48 = vpop.f32.mrf.mxu1 }
 0x187   : > { %v1949_v56 = vadd.f32 %v1855_v47, %v1595_v44  ;;  %v1241_v60 = vadd.f32 %v1148_v48, %v5824_v0  ;;  %v5200_v44 = vld [vmem:[%s5664_s7 + $0x130] sm:$0xff] }
 0x188   : > { %v2211_v57 = vpop.f32.mrf.mxu0 }
 0x189   : > { %v5949_v59 = vadd.f32 %v2209_v33, %v1949_v56  ;;  %v5166_v33 = vld [vmem:[%s5664_s7 + $0x10] sm:$0xff] }
 0x18c   : > { %v1503_v4 = vpop.f32.mrf.mxu2 }
 0x18d   : > { %v1596_v49 = vadd.f32 %v1503_v4, %v1241_v60  ;;  %v1857_v5 = vpop.f32.mrf.mxu3 }
 0x18e   : > { %v1151_v40 = vpop.f32.mrf.mxu1 }
 0x18f   : > { %v1950_v58 = vadd.f32 %v1857_v5, %v1596_v49  ;;  %v1242_v0 = vadd.f32 %v1151_v40, %v5834_v6 }
 0x190   : > { %v2214_v18 = vpop.f32.mrf.mxu0 }
 0x191   : > { %4294 = vmatmul.msk.bf16.gmra.mxu1 %vm767_vm0, %v5096_v34  ;;  %4412 = vmatmul.msk.bf16.gmra.mxu2 %vm767_vm0, %v5113_v7  ;;  %v5958_v20 = vadd.f32 %v2211_v57, %v1950_v58  ;;  %v5150_v58 = vld [vmem:[%s5664_s7 + $0x130] sm:$0xff] }
 0x192   : > { %4498 = vmatmul.msk.bf16.gmra.mxu3 %vm767_vm0, %v5130_v9 }
 0x193   : > { %4616 = vmatmul.msk.bf16.gmra.mxu0 %vm767_vm0, %v5147_v17 }
 0x194   : > { %v1506_v21 = vpop.f32.mrf.mxu2 }
 0x195   : > { %v1597_v22 = vadd.f32 %v1506_v21, %v1242_v0  ;;  %v1860_v24 = vpop.f32.mrf.mxu3  ;;  %v5184_v21 = vld [vmem:[%s5664_s7 + $0xa8] sm:$0xff] }
 0x196   : > { %v1153_v25 = vpop.f32.mrf.mxu1 }
 0x197   : > { %v1951_v26 = vadd.f32 %v1860_v24, %v1597_v22  ;;  %v1243_v29 = vadd.f32 %v1153_v25, %v5848_v12  ;;  %v5201_v22 = vld [vmem:[%s5664_s7 + $0x138] sm:$0xff] }
 0x198   : > { %v2216_v27 = vpop.f32.mrf.mxu0 }
 0x199   : > { %v5963_v28 = vadd.f32 %v2214_v18, %v1951_v26  ;;  %v5167_v18 = vld [vmem:[%s5664_s7 + $0x18] sm:$0xff] }
 0x19c   : > { %v1508_v13 = vpop.f32.mrf.mxu2 }
 0x19d   : > { %v1598_v61 = vadd.f32 %v1508_v13, %v1243_v29  ;;  %v1862_v32 = vpop.f32.mrf.mxu3 }
 0x19e   : > { %v1156_v52 = vpop.f32.mrf.mxu1 }
 0x19f   : > { %v1952_v6 = vadd.f32 %v1862_v32, %v1598_v61  ;;  %v1244_v12 = vadd.f32 %v1156_v52, %v5772_v38 }
 0x1a0   : > { %v2219_v47 = vpop.f32.mrf.mxu0 }
 0x1a1   : > { %4719 = vmatmul.msk.bf16.vlgmr.msra.gmra.mxu1 %vm767_vm0, %v5149_v46  ;;  %4805 = vmatmul.msk.bf16.vlgmr.msra.gmra.mxu2 %vm767_vm0, %v5166_v33  ;;  %v5972_v48 = vadd.f32 %v2216_v27, %v1952_v6  ;;  %v5151_v6 = vld [vmem:[%s5664_s7 + $0x138] sm:$0xff] }
 0x1a2   : > { %4923 = vmatmul.msk.bf16.vlgmr.msra.gmra.mxu3 %vm767_vm0, %v5183_v37 }
 0x1a3   : > { %5041 = vmatmul.msk.bf16.vlgmr.msra.gmra.mxu0 %vm767_vm0, %v5200_v44 }
 0x1a4   : > { %v1511_v56 = vpop.f32.mrf.mxu2 }
 0x1a5   : > { %v1599_v57 = vadd.f32 %v1511_v56, %v1244_v12  ;;  %v1865_v60 = vpop.f32.mrf.mxu3  ;;  %v5185_v56 = vld [vmem:[%s5664_s7 + $0xb0] sm:$0xff] }
 0x1a6   : > { %v1158_v4 = vpop.f32.mrf.mxu1 }
 0x1a7   : > { %v1953_v49 = vadd.f32 %v1865_v60, %v1599_v57  ;;  %v1245_v7 = vadd.f32 %v1158_v4, %v5780_v42  ;;  %v5202_v57 = vld [vmem:[%s5664_s7 + $0x140] sm:$0xff] }
 0x1a8   : > { %v2221_v5 = vpop.f32.mrf.mxu0 }
 0x1a9   : > { %v5977_v34 = vadd.f32 %v2219_v47, %v1953_v49  ;;  %v5168_v47 = vld [vmem:[%s5664_s7 + $0x20] sm:$0xff] }
 0x1ac   : > { %v1513_v40 = vpop.f32.mrf.mxu2 }
 0x1ad   : > { %v1600_v9 = vadd.f32 %v1513_v40, %v1245_v7  ;;  %v1867_v17 = vpop.f32.mrf.mxu3 }
 0x1ae   : > { %v1161_v0 = vpop.f32.mrf.mxu1 }
 0x1af   : > { %v1954_v38 = vadd.f32 %v1867_v17, %v1600_v9  ;;  %v1246_v42 = vadd.f32 %v1161_v0, %v5796_v50 }
 0x1b0   : > { %v2224_v24 = vpop.f32.mrf.mxu0 }
 0x1b1   : > { %4720 = vmatmul.msk.bf16.gmra.mxu1 %vm767_vm0, %v5150_v58  ;;  %4806 = vmatmul.msk.bf16.gmra.mxu2 %vm767_vm0, %v5167_v18  ;;  %v5986_v25 = vadd.f32 %v2221_v5, %v1954_v38  ;;  %v5152_v38 = vld [vmem:[%s5664_s7 + $0x140] sm:$0xff] }
 0x1b2   : > { %4924 = vmatmul.msk.bf16.gmra.mxu3 %vm767_vm0, %v5184_v21 }
 0x1b3   : > { %5042 = vmatmul.msk.bf16.gmra.mxu0 %vm767_vm0, %v5201_v22 }
 0x1b4   : > { %v1516_v26 = vpop.f32.mrf.mxu2 }
 0x1b5   : > { %v1601_v27 = vadd.f32 %v1516_v26, %v1246_v42  ;;  %v1870_v29 = vpop.f32.mrf.mxu3  ;;  %v5186_v26 = vld [vmem:[%s5664_s7 + $0xb8] sm:$0xff] }
 0x1b6   : > { %v1163_v13 = vpop.f32.mrf.mxu1 }
 0x1b7   : > { %v1955_v61 = vadd.f32 %v1870_v29, %v1601_v27  ;;  %v1247_v33 = vadd.f32 %v1163_v13, %v5804_v54  ;;  %v5203_v27 = vld [vmem:[%s5664_s7 + $0x148] sm:$0xff] }
 0x1b8   : > { %v2226_v32 = vpop.f32.mrf.mxu0 }
 0x1b9   : > { %v5991_v46 = vadd.f32 %v2224_v24, %v1955_v61  ;;  %v5169_v24 = vld [vmem:[%s5664_s7 + $0x28] sm:$0xff] }
 0x1bc   : > { %v1518_v52 = vpop.f32.mrf.mxu2 }
 0x1bd   : > { %v1602_v37 = vadd.f32 %v1518_v52, %v1247_v33  ;;  %v1872_v44 = vpop.f32.mrf.mxu3 }
 0x1be   : > { %v1166_v12 = vpop.f32.mrf.mxu1 }
 0x1bf   : > { %v1956_v50 = vadd.f32 %v1872_v44, %v1602_v37  ;;  %v1248_v54 = vadd.f32 %v1166_v12, %v5820_v62 }
 0x1c0   : > { %v2229_v60 = vpop.f32.mrf.mxu0 }
 0x1c1   : > { %4721 = vmatmul.msk.bf16.gmra.mxu1 %vm767_vm0, %v5151_v6  ;;  %4807 = vmatmul.msk.bf16.gmra.mxu2 %vm767_vm0, %v5168_v47  ;;  %v6000_v4 = vadd.f32 %v2226_v32, %v1956_v50  ;;  %v5153_v50 = vld [vmem:[%s5664_s7 + $0x148] sm:$0xff] }
 0x1c2   : > { %4925 = vmatmul.msk.bf16.gmra.mxu3 %vm767_vm0, %v5185_v56 }
 0x1c3   : > { %5043 = vmatmul.msk.bf16.gmra.mxu0 %vm767_vm0, %v5202_v57 }
 0x1c4   : > { %v1521_v49 = vpop.f32.mrf.mxu2 }
 0x1c5   : > { %v1603_v5 = vadd.f32 %v1521_v49, %v1248_v54  ;;  %v1875_v7 = vpop.f32.mrf.mxu3  ;;  %v5187_v49 = vld [vmem:[%s5664_s7 + $0xc0] sm:$0xff] }
 0x1c6   : > { %v1168_v40 = vpop.f32.mrf.mxu1 }
 0x1c7   : > { %v1957_v9 = vadd.f32 %v1875_v7, %v1603_v5  ;;  %v1249_v18 = vadd.f32 %v1168_v40, %v5828_v2  ;;  %v5204_v5 = vld [vmem:[%s5664_s7 + $0x150] sm:$0xff] }
 0x1c8   : > { %v2231_v17 = vpop.f32.mrf.mxu0 }
 0x1c9   : > { %v6005_v58 = vadd.f32 %v2229_v60, %v1957_v9  ;;  %v5170_v60 = vld [vmem:[%s5664_s7 + $0x30] sm:$0xff] }
 0x1cc   : > { %v1523_v0 = vpop.f32.mrf.mxu2 }
 0x1cd   : > { %v1604_v21 = vadd.f32 %v1523_v0, %v1249_v18  ;;  %v1877_v22 = vpop.f32.mrf.mxu3 }
 0x1ce   : > { %v1171_v42 = vpop.f32.mrf.mxu1 }
 0x1cf   : > { %v1958_v62 = vadd.f32 %v1877_v22, %v1604_v21  ;;  %v1250_v2 = vadd.f32 %v1171_v42, %v5844_v10 }
 0x1d0   : > { %v2234_v29 = vpop.f32.mrf.mxu0 }
 0x1d1   : > { %4722 = vmatmul.msk.bf16.gmra.mxu1 %vm767_vm0, %v5152_v38  ;;  %4808 = vmatmul.msk.bf16.gmra.mxu2 %vm767_vm0, %v5169_v24  ;;  %v6014_v13 = vadd.f32 %v2231_v17, %v1958_v62  ;;  %v5154_v62 = vld [vmem:[%s5664_s7 + $0x150] sm:$0xff] }
 0x1d2   : > { %4926 = vmatmul.msk.bf16.gmra.mxu3 %vm767_vm0, %v5186_v26 }
 0x1d3   : > { %5044 = vmatmul.msk.bf16.gmra.mxu0 %vm767_vm0, %v5203_v27 }
 0x1d4   : > { %v1526_v61 = vpop.f32.mrf.mxu2 }
 0x1d5   : > { %v1605_v32 = vadd.f32 %v1526_v61, %v1250_v2  ;;  %v1880_v33 = vpop.f32.mrf.mxu3  ;;  %v5188_v61 = vld [vmem:[%s5664_s7 + $0xc8] sm:$0xff] }
 0x1d6   : > { %v1173_v52 = vpop.f32.mrf.mxu1 }
 0x1d7   : > { %v1959_v37 = vadd.f32 %v1880_v33, %v1605_v32  ;;  %v1251_v47 = vadd.f32 %v1173_v52, %v5852_v14  ;;  %v5205_v32 = vld [vmem:[%s5664_s7 + $0x158] sm:$0xff] }
 0x1d8   : > { %v2236_v44 = vpop.f32.mrf.mxu0 }
 0x1d9   : > { %v6019_v6 = vadd.f32 %v2234_v29, %v1959_v37  ;;  %v5171_v29 = vld [vmem:[%s5664_s7 + $0x38] sm:$0xff] }
 0x1dc   : > { %v1528_v12 = vpop.f32.mrf.mxu2 }
 0x1dd   : > { %v1606_v56 = vadd.f32 %v1528_v12, %v1251_v47  ;;  %v1882_v57 = vpop.f32.mrf.mxu3 }
 0x1de   : > { %v1176_v54 = vpop.f32.mrf.mxu1 }
 0x1df   : > { %v1960_v10 = vadd.f32 %v1882_v57, %v1606_v56  ;;  %v1252_v14 = vadd.f32 %v1176_v54, %v5774_v39 }
 0x1e0   : > { %v2239_v7 = vpop.f32.mrf.mxu0 }
 0x1e1   : > { %4723 = vmatmul.msk.bf16.gmra.mxu1 %vm767_vm0, %v5153_v50  ;;  %4809 = vmatmul.msk.bf16.gmra.mxu2 %vm767_vm0, %v5170_v60  ;;  %v6028_v40 = vadd.f32 %v2236_v44, %v1960_v10  ;;  %v5155_v10 = vld [vmem:[%s5664_s7 + $0x158] sm:$0xff] }
 0x1e2   : > { %4927 = vmatmul.msk.bf16.gmra.mxu3 %vm767_vm0, %v5187_v49 }
 0x1e3   : > { %5045 = vmatmul.msk.bf16.gmra.mxu0 %vm767_vm0, %v5204_v5 }
 0x1e4   : > { %v1531_v9 = vpop.f32.mrf.mxu2 }
 0x1e5   : > { %v1607_v17 = vadd.f32 %v1531_v9, %v1252_v14  ;;  %v1885_v18 = vpop.f32.mrf.mxu3  ;;  %v5189_v9 = vld [vmem:[%s5664_s7 + $0xd0] sm:$0xff] }
 0x1e6   : > { %v1178_v0 = vpop.f32.mrf.mxu1 }
 0x1e7   : > { %v1961_v21 = vadd.f32 %v1885_v18, %v1607_v17  ;;  %v1253_v24 = vadd.f32 %v1178_v0, %v5782_v43  ;;  %v5206_v17 = vld [vmem:[%s5664_s7 + $0x160] sm:$0xff] }
 0x1e8   : > { %v2241_v22 = vpop.f32.mrf.mxu0 }
 0x1e9   : > { %v6033_v38 = vadd.f32 %v2239_v7, %v1961_v21  ;;  %v5172_v7 = vld [vmem:[%s5664_s7 + $0x40] sm:$0xff] }
 0x1ec   : > { %v1533_v42 = vpop.f32.mrf.mxu2 }
 0x1ed   : > { %v1608_v26 = vadd.f32 %v1533_v42, %v1253_v24  ;;  %v1887_v27 = vpop.f32.mrf.mxu3 }
 0x1ee   : > { %v1181_v2 = vpop.f32.mrf.mxu1 }
 0x1ef   : > { %v1962_v39 = vadd.f32 %v1887_v27, %v1608_v26  ;;  %v1254_v43 = vadd.f32 %v1181_v2, %v5798_v51 }
 0x1f0   : > { %v2244_v33 = vpop.f32.mrf.mxu0 }
 0x1f1   : > { %4724 = vmatmul.msk.bf16.gmra.mxu1 %vm767_vm0, %v5154_v62  ;;  %4810 = vmatmul.msk.bf16.gmra.mxu2 %vm767_vm0, %v5171_v29  ;;  %v6042_v52 = vadd.f32 %v2241_v22, %v1962_v39  ;;  %v5156_v39 = vld [vmem:[%s5664_s7 + $0x160] sm:$0xff] }
 0x1f2   : > { %4928 = vmatmul.msk.bf16.gmra.mxu3 %vm767_vm0, %v5188_v61 }
 0x1f3   : > { %5046 = vmatmul.msk.bf16.gmra.mxu0 %vm767_vm0, %v5205_v32 }
 0x1f4   : > { %v1536_v37 = vpop.f32.mrf.mxu2 }
 0x1f5   : > { %v1609_v44 = vadd.f32 %v1536_v37, %v1254_v43  ;;  %v1890_v47 = vpop.f32.mrf.mxu3  ;;  %v5190_v37 = vld [vmem:[%s5664_s7 + $0xd8] sm:$0xff] }
 0x1f6   : > { %v1183_v12 = vpop.f32.mrf.mxu1 }
 0x1f7   : > { %v1963_v56 = vadd.f32 %v1890_v47, %v1609_v44  ;;  %v1255_v60 = vadd.f32 %v1183_v12, %v5806_v55  ;;  %v5207_v44 = vld [vmem:[%s5664_s7 + $0x168] sm:$0xff] }
 0x1f8   : > { %v2246_v57 = vpop.f32.mrf.mxu0 }
 0x1f9   : > { %v6047_v50 = vadd.f32 %v2244_v33, %v1963_v56  ;;  %v5173_v33 = vld [vmem:[%s5664_s7 + $0x48] sm:$0xff] }
 0x1fc   : > { %v1538_v54 = vpop.f32.mrf.mxu2 }
 0x1fd   : > { %v1610_v49 = vadd.f32 %v1538_v54, %v1255_v60  ;;  %v1892_v5 = vpop.f32.mrf.mxu3 }
 0x1fe   : > { %v1186_v14 = vpop.f32.mrf.mxu1 }
 0x1ff   : > { %v1964_v51 = vadd.f32 %v1892_v5, %v1610_v49  ;;  %v1256_v55 = vadd.f32 %v1186_v14, %v5822_v63 }
 0x200   : > { %v2249_v18 = vpop.f32.mrf.mxu0 }
 0x201   : > { %4725 = vmatmul.msk.bf16.gmra.mxu1 %vm767_vm0, %v5155_v10  ;;  %4811 = vmatmul.msk.bf16.gmra.mxu2 %vm767_vm0, %v5172_v7  ;;  %v6056_v0 = vadd.f32 %v2246_v57, %v1964_v51  ;;  %v5157_v51 = vld [vmem:[%s5664_s7 + $0x168] sm:$0xff] }
 0x202   : > { %4929 = vmatmul.msk.bf16.gmra.mxu3 %vm767_vm0, %v5189_v9 }
 0x203   : > { %5047 = vmatmul.msk.bf16.gmra.mxu0 %vm767_vm0, %v5206_v17 }
 0x204   : > { %v1541_v21 = vpop.f32.mrf.mxu2 }
 0x205   : > { %v1611_v22 = vadd.f32 %v1541_v21, %v1256_v55  ;;  %v1895_v24 = vpop.f32.mrf.mxu3  ;;  %v5191_v21 = vld [vmem:[%s5664_s7 + $0xe0] sm:$0xff] }
 0x206   : > { %v1188_v42 = vpop.f32.mrf.mxu1 }
 0x207   : > { %v1965_v26 = vadd.f32 %v1895_v24, %v1611_v22  ;;  %v1257_v29 = vadd.f32 %v1188_v42, %v5830_v3  ;;  %v5208_v22 = vld [vmem:[%s5664_s7 + $0x170] sm:$0xff] }
 0x208   : > { %v2251_v27 = vpop.f32.mrf.mxu0 }
 0x209   : > { %v6061_v62 = vadd.f32 %v2249_v18, %v1965_v26  ;;  %v5174_v18 = vld [vmem:[%s5664_s7 + $0x50] sm:$0xff] }
 0x20c   : > { %v1543_v2 = vpop.f32.mrf.mxu2 }
 0x20d   : > { %v1612_v61 = vadd.f32 %v1543_v2, %v1257_v29  ;;  %v1897_v32 = vpop.f32.mrf.mxu3 }
 0x20e   : > { %v1191_v43 = vpop.f32.mrf.mxu1 }
 0x20f   : > { %v1966_v63 = vadd.f32 %v1897_v32, %v1612_v61  ;;  %v1258_v3 = vadd.f32 %v1191_v43, %v5846_v11 }
 0x210   : > { %v2254_v47 = vpop.f32.mrf.mxu0 }
 0x211   : > { %4726 = vmatmul.msk.bf16.gmra.mxu1 %vm767_vm0, %v5156_v39  ;;  %4812 = vmatmul.msk.bf16.gmra.mxu2 %vm767_vm0, %v5173_v33  ;;  %v6070_v12 = vadd.f32 %v2251_v27, %v1966_v63  ;;  %v5175_v63 = vld [vmem:[%s5664_s7 + $0x58] sm:$0xff] }
 0x212   : > { %4930 = vmatmul.msk.bf16.gmra.mxu3 %vm767_vm0, %v5190_v37 }
 0x213   : > { %5048 = vmatmul.msk.bf16.gmra.mxu0 %vm767_vm0, %v5207_v44  ;;  %v5158_v44 = vld [vmem:[%s5664_s7 + $0x170] sm:$0xff] }
 0x214   : > { %v1546_v56 = vpop.f32.mrf.mxu2 }
 0x215   : > { %v1613_v57 = vadd.f32 %v1546_v56, %v1258_v3  ;;  %v1900_v60 = vpop.f32.mrf.mxu3  ;;  %v5192_v56 = vld [vmem:[%s5664_s7 + $0xe8] sm:$0xff] }
 0x216   : > { %v1193_v54 = vpop.f32.mrf.mxu1 }
 0x217   : > { %v1967_v49 = vadd.f32 %v1900_v60, %v1613_v57  ;;  %v1259_v7 = vadd.f32 %v1193_v54, %v5854_v15  ;;  %v5209_v57 = vld [vmem:[%s5664_s7 + $0x178] sm:$0xff] }
 0x218   : > { %v2256_v5 = vpop.f32.mrf.mxu0 }
 0x219   : > { %v6075_v10 = vadd.f32 %v2254_v47, %v1967_v49 }
 0x21c   : > { %v1548_v14 = vpop.f32.mrf.mxu2 }
 0x21d   : > { %v1614_v9 = vadd.f32 %v1548_v14, %v1259_v7  ;;  %v1902_v17 = vpop.f32.mrf.mxu3 }
 0x21e   : > { %v2533_v55 = vpop.f32.mrf.mxu1 }
 0x21f   : > { %v1968_v11 = vadd.f32 %v1902_v17, %v1614_v9  ;;  %v2645_v15 = vadd.f32 %v2533_v55, %v5866_v30 }
 0x220   : > { %v3595_v24 = vpop.f32.mrf.mxu0 }
 0x221   : > { %4727 = vmatmul.msk.bf16.gmra.mxu1 %vm767_vm0, %v5157_v51  ;;  %4813 = vmatmul.msk.bf16.gmra.mxu2 %vm767_vm0, %v5174_v18  ;;  %v6084_v42 = vadd.f32 %v2256_v5, %v1968_v11 }
 0x222   : > { %4931 = vmatmul.msk.bf16.gmra.mxu3 %vm767_vm0, %v5191_v21 }
 0x223   : > { %5049 = vmatmul.msk.bf16.gmra.mxu0 %vm767_vm0, %v5208_v22 }
 0x224   : > { %v2887_v26 = vpop.f32.mrf.mxu2 }
 0x225   : > { %v3241_v27 = vpop.f32.mrf.mxu3  ;;  %v2999_v29 = vadd.f32 %v2887_v26, %v2645_v15 }
 0x226   : > { %v2535_v2 = vpop.f32.mrf.mxu1 }
 0x227   : > { %v3353_v32 = vadd.f32 %v3241_v27, %v2999_v29  ;;  %v2646_v39 = vadd.f32 %v2535_v2, %v5875_v41 }
 0x228   : > { %v3597_v61 = vpop.f32.mrf.mxu0 }
 0x229   : > { %v3707_v47 = vadd.f32 %v3595_v24, %v3353_v32  ;;  %v5176_v32 = vld [vmem:[%s5664_s7 + $0x60] sm:$0xff] }
 0x22b   : > { %v3904_v49 = vmul.f32 %v3707_v47, %v3707_v47 }
 0x22c   : > { %v2889_v33 = vpop.f32.mrf.mxu2 }
 0x22d   : > { %v3000_v43 = vadd.f32 %v2889_v33, %v2646_v39  ;;  %v3243_v37 = vpop.f32.mrf.mxu3  ;;  %v5193_v33 = vld [vmem:[%s5664_s7 + $0xf0] sm:$0xff] }
 0x22e   : > { %v2538_v3 = vpop.f32.mrf.mxu1 }
 0x22f   : > { %v3354_v30 = vadd.f32 %v3243_v37, %v3000_v43  ;;  %v2647_v14 = vadd.f32 %v2538_v3, %v5880_v8  ;;  %v5210_v43 = vld [vmem:[%s5664_s7 + $0x180] sm:$0xff] }
 0x230   : > { %v3600_v60 = vpop.f32.mrf.mxu0 }
 0x231   : > { %v3708_v54 = vadd.f32 %v3597_v61, %v3354_v30  ;;  %4728 = vmatmul.msk.bf16.gmra.mxu1 %vm767_vm0, %v5158_v44  ;;  %4814 = vmatmul.msk.bf16.gmra.mxu2 %vm767_vm0, %v5175_v63  ;;  %v5159_v61 = vld [vmem:[%s5664_s7 + $0x178] sm:$0xff] }
 0x232   : > { %4932 = vmatmul.msk.bf16.gmra.mxu3 %vm767_vm0, %v5192_v56 }
 0x233   : > { %5050 = vmatmul.msk.bf16.gmra.mxu0 %vm767_vm0, %v5209_v57  ;;  %v5221_v41 = vpack.c.bf16 %v3708_v54, %v3707_v47  ;;  %v3867_v5 = vadd.f32 %v3708_v54, %v3707_v47  ;;  %v3905_v7 = vmul.f32 %v3708_v54, %v3708_v54 }
 0x234   : > { %v2892_v9 = vpop.f32.mrf.mxu2 }
 0x235   : > { %5222 = vst [vmem:[%s5666_s8] sm:$0xff] %v5221_v41   ;;  %v3936_v17 = vadd.f32 %v3905_v7, %v3904_v49  ;;  %v3001_v51 = vadd.f32 %v2892_v9, %v2647_v14  ;;  %v3246_v18 = vpop.f32.mrf.mxu3 }
 0x236   : > { %v2540_v55 = vpop.f32.mrf.mxu1 }
 0x237   : > { %v3355_v21 = vadd.f32 %v3246_v18, %v3001_v51  ;;  %v2648_v26 = vadd.f32 %v2540_v55, %v5889_v53 }
 0x238   : > { %v3602_v22 = vpop.f32.mrf.mxu0 }
 0x239   : > { %v3709_v11 = vadd.f32 %v3600_v60, %v3355_v21  ;;  %v5160_v21 = vld [vmem:[%s5664_s7 + $0x180] sm:$0xff] }
 0x23b   : > { %v3868_v24 = vadd.f32 %v3867_v5, %v3709_v11  ;;  %v3906_v15 = vmul.f32 %v3709_v11, %v3709_v11 }
 0x23c   : > { %v2894_v27 = vpop.f32.mrf.mxu2 }
 0x23d   : > { %v3937_v29 = vadd.f32 %v3936_v17, %v3906_v15  ;;  %v3002_v8 = vadd.f32 %v2894_v27, %v2648_v26  ;;  %v3248_v2 = vpop.f32.mrf.mxu3  ;;  %v5211_v15 = vld [vmem:[%s5664_s7 + $0x188] sm:$0xff] }
 0x23e   : > { %v2543_v39 = vpop.f32.mrf.mxu1 }
 0x23f   : > { %v3356_v37 = vadd.f32 %v3248_v2, %v3002_v8  ;;  %v2649_v56 = vadd.f32 %v2543_v39, %v5894_v35 }
 0x240   : > { %v3605_v44 = vpop.f32.mrf.mxu0 }
 0x241   : > { %v3710_v63 = vadd.f32 %v3602_v22, %v3356_v37  ;;  %4729 = vmatmul.msk.bf16.gmra.mxu1 %vm767_vm0, %v5159_v61  ;;  %4815 = vmatmul.msk.bf16.gmra.mxu2 %vm767_vm0, %v5176_v32  ;;  %v5177_v22 = vld [vmem:[%s5664_s7 + $0x68] sm:$0xff] }
 0x242   : > { %4933 = vmatmul.msk.bf16.gmra.mxu3 %vm767_vm0, %v5193_v33 }
 0x243   : > { %5051 = vmatmul.msk.bf16.gmra.mxu0 %vm767_vm0, %v5210_v43  ;;  %v5226_v53 = vpack.c.bf16 %v3710_v63, %v3709_v11  ;;  %v3869_v47 = vadd.f32 %v3868_v24, %v3710_v63  ;;  %v3907_v3 = vmul.f32 %v3710_v63, %v3710_v63  ;;  %v5194_v24 = vld [vmem:[%s5664_s7 + $0xf8] sm:$0xff] }
 0x244   : > { %v2897_v57 = vpop.f32.mrf.mxu2 }
 0x245   : > { %5298 = vst [vmem:[%s5666_s8 + $0x8] sm:$0xff] %v5226_v53   ;;  %v3938_v30 = vadd.f32 %v3937_v29, %v3907_v3  ;;  %v3003_v60 = vadd.f32 %v2897_v57, %v2649_v56  ;;  %v3251_v54 = vpop.f32.mrf.mxu3 }
 0x246   : > { %v2545_v49 = vpop.f32.mrf.mxu1 }
 0x247   : > { %v3357_v41 = vadd.f32 %v3251_v54, %v3003_v60  ;;  %v2650_v17 = vadd.f32 %v2545_v49, %v5903_v1  ;;  %v5161_v54 = vld [vmem:[%s5664_s7 + $0x188] sm:$0xff]  ;;  %v5178_v49 = vld [vmem:[%s5664_s7 + $0x70] sm:$0xff] }
 0x248   : > { %v3607_v5 = vpop.f32.mrf.mxu0 }
 0x249   : > { %v3711_v7 = vadd.f32 %v3605_v44, %v3357_v41 }
 0x24b   : > { %v3870_v14 = vadd.f32 %v3869_v47, %v3711_v7  ;;  %v3908_v9 = vmul.f32 %v3711_v7, %v3711_v7 }
 0x24c   : > { %v2899_v51 = vpop.f32.mrf.mxu2 }
 0x24d   : > { %v3939_v18 = vadd.f32 %v3938_v30, %v3908_v9  ;;  %v3004_v35 = vadd.f32 %v2899_v51, %v2650_v17  ;;  %v3253_v55 = vpop.f32.mrf.mxu3 }
 0x24e   : > { %v2548_v11 = vpop.f32.mrf.mxu1 }
 0x24f   : > { %v3358_v26 = vadd.f32 %v3253_v55, %v3004_v35  ;;  %v2651_v61 = vadd.f32 %v2548_v11, %v5908_v19 }
 0x250   : > { %v3610_v27 = vpop.f32.mrf.mxu0 }
 0x251   : > { %v3712_v29 = vadd.f32 %v3607_v5, %v3358_v26  ;;  %4730 = vmatmul.msk.bf16.gmra.mxu1 %vm767_vm0, %v5160_v21  ;;  %4816 = vmatmul.msk.bf16.gmra.mxu2 %vm767_vm0, %v5177_v22  ;;  %v5195_v5 = vld [vmem:[%s5664_s7 + $0x100] sm:$0xff] }
 0x252   : > { %4934 = vmatmul.msk.bf16.gmra.mxu3 %vm767_vm0, %v5194_v24 }
 0x253   : > { %5052 = vmatmul.msk.bf16.gmra.mxu0 %vm767_vm0, %v5211_v15  ;;  %v5231_v1 = vpack.c.bf16 %v3712_v29, %v3711_v7  ;;  %v3871_v8 = vadd.f32 %v3870_v14, %v3712_v29  ;;  %v3909_v2 = vmul.f32 %v3712_v29, %v3712_v29  ;;  %v5212_v7 = vld [vmem:[%s5664_s7 + $0x190] sm:$0xff] }
 0x254   : > { %v2902_v32 = vpop.f32.mrf.mxu2 }
 0x255   : > { %5299 = vst [vmem:[%s5666_s8 + $0x10] sm:$0xff] %v5231_v1   ;;  %v3940_v39 = vadd.f32 %v3939_v18, %v3909_v2  ;;  %v3005_v33 = vadd.f32 %v2902_v32, %v2651_v61  ;;  %v3256_v43 = vpop.f32.mrf.mxu3 }
 0x256   : > { %v2550_v37 = vpop.f32.mrf.mxu1 }
 0x257   : > { %v3359_v44 = vadd.f32 %v3256_v43, %v3005_v33  ;;  %v2652_v56 = vadd.f32 %v2550_v37, %v5916_v31  ;;  %v5179_v33 = vld [vmem:[%s5664_s7 + $0x78] sm:$0xff]  ;;  %v5196_v37 = vld [vmem:[%s5664_s7 + $0x108] sm:$0xff] }
 0x258   : > { %v3612_v63 = vpop.f32.mrf.mxu0 }
 0x259   : > { %v3713_v53 = vadd.f32 %v3610_v27, %v3359_v44  ;;  %v5213_v44 = vld [vmem:[%s5664_s7 + $0x198] sm:$0xff] }
 0x25b   : > { %v3872_v47 = vadd.f32 %v3871_v8, %v3713_v53  ;;  %v3910_v3 = vmul.f32 %v3713_v53, %v3713_v53 }
 0x25c   : > { %v2904_v57 = vpop.f32.mrf.mxu2 }
 0x25d   : > { %v3941_v30 = vadd.f32 %v3940_v39, %v3910_v3  ;;  %v3006_v19 = vadd.f32 %v2904_v57, %v2652_v56  ;;  %v3258_v60 = vpop.f32.mrf.mxu3  ;;  %v5162_v39 = vld [vmem:[%s5664_s7 + $0x190] sm:$0xff] }
 0x25e   : > { %v2553_v41 = vpop.f32.mrf.mxu1 }
 0x25f   : > { %v3360_v14 = vadd.f32 %v3258_v60, %v3006_v19  ;;  %v2653_v35 = vadd.f32 %v2553_v41, %v5921_v45 }
 0x260   : > { %v3615_v9 = vpop.f32.mrf.mxu0 }
 0x261   : > { %v3714_v17 = vadd.f32 %v3612_v63, %v3360_v14  ;;  %4731 = vmatmul.msk.bf16.gmra.mxu1 %vm767_vm0, %v5161_v54  ;;  %4817 = vmatmul.msk.bf16.gmra.mxu2 %vm767_vm0, %v5178_v49 }
 0x262   : > { %4935 = vmatmul.msk.bf16.gmra.mxu3 %vm767_vm0, %v5195_v5 }
 0x263   : > { %5053 = vmatmul.msk.bf16.gmra.mxu0 %vm767_vm0, %v5212_v7  ;;  %v5236_v31 = vpack.c.bf16 %v3714_v17, %v3713_v53  ;;  %v3873_v51 = vadd.f32 %v3872_v47, %v3714_v17  ;;  %v3911_v18 = vmul.f32 %v3714_v17, %v3714_v17 }
 0x264   : > { %v2907_v55 = vpop.f32.mrf.mxu2 }
 0x265   : > { %5300 = vst [vmem:[%s5666_s8 + $0x18] sm:$0xff] %v5236_v31   ;;  %v3942_v21 = vadd.f32 %v3941_v30, %v3911_v18  ;;  %v3007_v22 = vadd.f32 %v2907_v55, %v2653_v35  ;;  %v3261_v11 = vpop.f32.mrf.mxu3  ;;  %v5163_v35 = vld [vmem:[%s5664_s7 + $0x198] sm:$0xff]  ;;  %v5180_v55 = vld [vmem:[%s5664_s7 + $0x80] sm:$0xff] }
 0x266   : > { %v2555_v24 = vpop.f32.mrf.mxu1 }
 0x267   : > { %v3361_v15 = vadd.f32 %v3261_v11, %v3007_v22  ;;  %v2654_v8 = vadd.f32 %v2555_v24, %v5930_v16  ;;  %v5197_v22 = vld [vmem:[%s5664_s7 + $0x110] sm:$0xff]  ;;  %v5214_v11 = vld [vmem:[%s5664_s7 + $0x1a0] sm:$0xff] }
 0x268   : > { %v3617_v26 = vpop.f32.mrf.mxu0 }
 0x269   : > { %v3715_v27 = vadd.f32 %v3615_v9, %v3361_v15 }
 0x26b   : > { %v3874_v29 = vadd.f32 %v3873_v51, %v3715_v27  ;;  %v3912_v1 = vmul.f32 %v3715_v27, %v3715_v27 }
 0x26c   : > { %v2909_v2 = vpop.f32.mrf.mxu2 }
 0x26d   : > { %v3943_v61 = vadd.f32 %v3942_v21, %v3912_v1  ;;  %v3008_v45 = vadd.f32 %v2909_v2, %v2654_v8  ;;  %v3263_v32 = vpop.f32.mrf.mxu3 }
 0x26e   : > { %v2558_v43 = vpop.f32.mrf.mxu1 }
 0x26f   : > { %v3362_v63 = vadd.f32 %v3263_v32, %v3008_v45  ;;  %v2655_v57 = vadd.f32 %v2558_v43, %v5935_v23 }
 0x270   : > { %v3620_v53 = vpop.f32.mrf.mxu0 }
 0x271   : > { %v3716_v47 = vadd.f32 %v3617_v26, %v3362_v63  ;;  %4732 = vmatmul.msk.bf16.gmra.mxu1 %vm767_vm0, %v5162_v39  ;;  %4818 = vmatmul.msk.bf16.gmra.mxu2 %vm767_vm0, %v5179_v33 }
 0x272   : > { %4936 = vmatmul.msk.bf16.gmra.mxu3 %vm767_vm0, %v5196_v37 }
 0x273   : > { %5054 = vmatmul.msk.bf16.gmra.mxu0 %vm767_vm0, %v5213_v44  ;;  %v5241_v16 = vpack.c.bf16 %v3716_v47, %v3715_v27  ;;  %v3875_v3 = vadd.f32 %v3874_v29, %v3716_v47  ;;  %v3913_v56 = vmul.f32 %v3716_v47, %v3716_v47 }
 0x274   : > { %v2912_v30 = vpop.f32.mrf.mxu2 }
 0x275   : > { %5301 = vst [vmem:[%s5666_s8 + $0x20] sm:$0xff] %v5241_v16   ;;  %v3944_v19 = vadd.f32 %v3943_v61, %v3913_v56  ;;  %v3009_v60 = vadd.f32 %v2912_v30, %v2655_v57  ;;  %v3266_v54 = vpop.f32.mrf.mxu3  ;;  %v5181_v56 = vld [vmem:[%s5664_s7 + $0x88] sm:$0xff]  ;;  %v5198_v30 = vld [vmem:[%s5664_s7 + $0x118] sm:$0xff] }
 0x276   : > { %v2560_v49 = vpop.f32.mrf.mxu1 }
 0x277   : > { %v3363_v41 = vadd.f32 %v3266_v54, %v3009_v60  ;;  %v2656_v17 = vadd.f32 %v2560_v49, %v5944_v36 }
 0x278   : > { %v3622_v5 = vpop.f32.mrf.mxu0 }
 0x279   : > { %v3717_v7 = vadd.f32 %v3620_v53, %v3363_v41 }
 0x27b   : > { %v3876_v14 = vadd.f32 %v3875_v3, %v3717_v7  ;;  %v3914_v9 = vmul.f32 %v3717_v7, %v3717_v7  ;;  %v5164_v3 = vld [vmem:[%s5664_s7 + $0x1a0] sm:$0xff] }
 0x27c   : > { %v2914_v31 = vpop.f32.mrf.mxu2 }
 0x27d   : > { %v3945_v51 = vadd.f32 %v3944_v19, %v3914_v9  ;;  %v3010_v23 = vadd.f32 %v2914_v31, %v2656_v17  ;;  %v3268_v18 = vpop.f32.mrf.mxu3  ;;  %v5215_v19 = vld [vmem:[%s5664_s7 + $0x1a8] sm:$0xff]  ;;  %s5217_s7 = sshll.u32 %s5509_s16, 7 }
 0x27e   : > { %v2563_v21 = vpop.f32.mrf.mxu1  ;;  %s3990_s20 = scalar_lea.hbm %s6237_s2, %s5217_s7 }
 0x27f   : > { %v3364_v24 = vadd.f32 %v3268_v18, %v3010_v23  ;;  %v2657_v1 = vadd.f32 %v2563_v21, %v5949_v59  ;;  %s3993_s25 = sshll.u32 %s3990_s20, 4  ;;  %s3994_s25 = int_to_ptr.hbm [resolvable:$true] %s3993_s25 }
 0x280   : > { %v3625_v15 = vpop.f32.mrf.mxu0  ;;  %s5382_s27 = sshra.s32 %s3994_s25, 4  ;;  %s5383_s27 = int_to_ptr.hbm [resolvable:$true] %s5382_s27 }
 0x281   : > { %v3718_v26 = vadd.f32 %v3622_v5, %v3364_v24  ;;  %4733 = vmatmul.msk.bf16.gmra.mxu1 %vm767_vm0, %v5163_v35  ;;  %4819 = vmatmul.msk.bf16.gmra.mxu2 %vm767_vm0, %v5180_v55  ;;  %s5384_s28 = scalar_lea.hbm %s5383_s27, 128  ;;  %p5389_p4 = scmp.lt.s32.totalorder %s5383_s27, %s6237_s2 }
 0x282   : > { %4937 = vmatmul.msk.bf16.gmra.mxu3 %vm767_vm0, %v5197_v22  ;;  %p5385_p0 = scmp.ne.s32.totalorder %s5383_s27, %s5384_s28  ;;  %p5390_p5 = scmp.lt.s32.totalorder %s5388_s5, %s5384_s28 }
 0x283   : > { %5055 = vmatmul.msk.bf16.gmra.mxu0 %vm767_vm0, %v5214_v11  ;;  %v5246_v36 = vpack.c.bf16 %v3718_v26, %v3717_v7  ;;  %v3877_v27 = vadd.f32 %v3876_v14, %v3718_v26  ;;  %v3915_v29 = vmul.f32 %v3718_v26, %v3718_v26 }
 0x284   : > { %v2917_v8 = vpop.f32.mrf.mxu2  ;;  %p5386_p1 = pnand %p5385_p0, %p5529_p6  ;;  %p5391_p7 = por %p5390_p5, %p5389_p4 }
 0x285   : > { %5302 = vst [vmem:[%s5666_s8 + $0x28] sm:$0xff] %v5246_v36   ;;  %v3946_v2 = vadd.f32 %v3945_v51, %v3915_v29  ;;  %v3011_v61 = vadd.f32 %v2917_v8, %v2657_v1  ;;  %v3271_v45 = vpop.f32.mrf.mxu3 }
 0x286   : > { %v2565_v32 = vpop.f32.mrf.mxu1  ;;  %p5387_p2 = pneg %p5386_p1 }
 0x287   : > { %v3365_v39 = vadd.f32 %v3271_v45, %v3011_v61  ;;  %v2658_v63 = vadd.f32 %v2565_v32, %v5958_v20 }
 0x288   : > { %v3627_v33 = vpop.f32.mrf.mxu0  ;;  %p5392_p10 = pnand %p5391_p7, %p5387_p2 }
 0x289   : > { %v3719_v43 = vadd.f32 %v3625_v15, %v3365_v39 }
 0x28b   : > { %v3878_v37 = vadd.f32 %v3877_v27, %v3719_v43  ;;  %v3916_v44 = vmul.f32 %v3719_v43, %v3719_v43 }
 0x28c   : > { %v2919_v53 = vpop.f32.mrf.mxu2 }
 0x28d   : > { %v3947_v47 = vadd.f32 %v3946_v2, %v3916_v44  ;;  %v3012_v59 = vadd.f32 %v2919_v53, %v2658_v63  ;;  %v3273_v16 = vpop.f32.mrf.mxu3 }
 0x28e   : > { %v2568_v57 = vpop.f32.mrf.mxu1 }
 0x28f   : > { %v3366_v60 = vadd.f32 %v3273_v16, %v3012_v59  ;;  %v2659_v7 = vadd.f32 %v2568_v57, %v5963_v28 }
 0x290   : > { %v3630_v54 = vpop.f32.mrf.mxu0 }
 0x291   : > { %v3720_v49 = vadd.f32 %v3627_v33, %v3366_v60  ;;  %4734 = vmatmul.msk.bf16.gmra.mxu1 %vm767_vm0, %v5164_v3  ;;  %4820 = vmatmul.msk.bf16.gmra.mxu2 %vm767_vm0, %v5181_v56 }
 0x292   : > { %4938 = vmatmul.msk.bf16.gmra.mxu3 %vm767_vm0, %v5198_v30 }
 0x293   : > { %5056 = vmatmul.msk.bf16.gmra.mxu0 %vm767_vm0, %v5215_v19  ;;  %v5251_v20 = vpack.c.bf16 %v3720_v49, %v3719_v43  ;;  %v3879_v41 = vadd.f32 %v3878_v37, %v3720_v49  ;;  %v3917_v5 = vmul.f32 %v3720_v49, %v3720_v49 }
 0x294   : > { %v2922_v14 = vpop.f32.mrf.mxu2 }
 0x295   : > { %5303 = vst [vmem:[%s5666_s8 + $0x30] sm:$0xff] %v5251_v20   ;;  %v3948_v9 = vadd.f32 %v3947_v47, %v3917_v5  ;;  %v3013_v17 = vadd.f32 %v2922_v14, %v2659_v7  ;;  %v3276_v31 = vpop.f32.mrf.mxu3 }
 0x296   : > { %v2570_v51 = vpop.f32.mrf.mxu1 }
 0x297   : > { %v3367_v23 = vadd.f32 %v3276_v31, %v3013_v17  ;;  %v2660_v22 = vadd.f32 %v2570_v51, %v5972_v48 }
 0x298   : > { %v3632_v18 = vpop.f32.mrf.mxu0 }
 0x299   : > { %v3721_v35 = vadd.f32 %v3630_v54, %v3367_v23 }
 0x29b   : > { %v3880_v55 = vadd.f32 %v3879_v41, %v3721_v35  ;;  %v3918_v21 = vmul.f32 %v3721_v35, %v3721_v35 }
 0x29c   : > { %v2924_v11 = vpop.f32.mrf.mxu2 }
 0x29d   : > { %v3949_v24 = vadd.f32 %v3948_v9, %v3918_v21  ;;  %v3014_v15 = vadd.f32 %v2924_v11, %v2660_v22  ;;  %v3278_v26 = vpop.f32.mrf.mxu3 }
 0x29e   : > { %v2573_v36 = vpop.f32.mrf.mxu1 }
 0x29f   : > { %v3368_v28 = vadd.f32 %v3278_v26, %v3014_v15  ;;  %v2661_v61 = vadd.f32 %v2573_v36, %v5977_v34 }
 0x2a0   : > { %v3635_v27 = vpop.f32.mrf.mxu0 }
 0x2a1   : > { %v3722_v29 = vadd.f32 %v3632_v18, %v3368_v28 }
 0x2a3   : > { %v5256_v1 = vpack.c.bf16 %v3722_v29, %v3721_v35  ;;  %v3881_v8 = vadd.f32 %v3880_v55, %v3722_v29  ;;  %v3919_v2 = vmul.f32 %v3722_v29, %v3722_v29 }
 0x2a4   : > { %v2927_v45 = vpop.f32.mrf.mxu2 }
 0x2a5   : > { %5304 = vst [vmem:[%s5666_s8 + $0x38] sm:$0xff] %v5256_v1   ;;  %v3950_v32 = vadd.f32 %v3949_v24, %v3919_v2  ;;  %v3015_v39 = vadd.f32 %v2927_v45, %v2661_v61  ;;  %v3281_v33 = vpop.f32.mrf.mxu3 }
 0x2a6   : > { %v2575_v43 = vpop.f32.mrf.mxu1 }
 0x2a7   : > { %v3369_v48 = vadd.f32 %v3281_v33, %v3015_v39  ;;  %v2662_v47 = vadd.f32 %v2575_v43, %v5986_v25 }
 0x2a8   : > { %v3637_v37 = vpop.f32.mrf.mxu0 }
 0x2a9   : > { %v3723_v44 = vadd.f32 %v3635_v27, %v3369_v48 }
 0x2ab   : > { %v3882_v63 = vadd.f32 %v3881_v8, %v3723_v44  ;;  %v3920_v53 = vmul.f32 %v3723_v44, %v3723_v44 }
 0x2ac   : > { %v2929_v59 = vpop.f32.mrf.mxu2 }
 0x2ad   : > { %v3951_v16 = vadd.f32 %v3950_v32, %v3920_v53  ;;  %v3016_v3 = vadd.f32 %v2929_v59, %v2662_v47  ;;  %v3283_v56 = vpop.f32.mrf.mxu3 }
 0x2ae   : > { %v2578_v57 = vpop.f32.mrf.mxu1 }
 0x2af   : > { %v3370_v34 = vadd.f32 %v3283_v56, %v3016_v3  ;;  %v2663_v20 = vadd.f32 %v2578_v57, %v5991_v46 }
 0x2b0   : > { %v3640_v30 = vpop.f32.mrf.mxu0 }
 0x2b1   : > { %v3724_v19 = vadd.f32 %v3637_v37, %v3370_v34 }
 0x2b3   : > { %v5261_v60 = vpack.c.bf16 %v3724_v19, %v3723_v44  ;;  %v3883_v54 = vadd.f32 %v3882_v63, %v3724_v19  ;;  %v3921_v49 = vmul.f32 %v3724_v19, %v3724_v19 }
 0x2b4   : > { %v2932_v41 = vpop.f32.mrf.mxu2 }
 0x2b5   : > { %5305 = vst [vmem:[%s5666_s8 + $0x40] sm:$0xff] %v5261_v60   ;;  %v3952_v5 = vadd.f32 %v3951_v16, %v3921_v49  ;;  %v3017_v7 = vadd.f32 %v2932_v41, %v2663_v20  ;;  %v3286_v14 = vpop.f32.mrf.mxu3 }
 0x2b6   : > { %v2580_v9 = vpop.f32.mrf.mxu1 }
 0x2b7   : > { %v3371_v25 = vadd.f32 %v3286_v14, %v3017_v7  ;;  %v2664_v18 = vadd.f32 %v2580_v9, %v6000_v4 }
 0x2b8   : > { %v3642_v17 = vpop.f32.mrf.mxu0 }
 0x2b9   : > { %v3725_v31 = vadd.f32 %v3640_v30, %v3371_v25 }
 0x2bb   : > { %v3884_v51 = vadd.f32 %v3883_v54, %v3725_v31  ;;  %v3922_v23 = vmul.f32 %v3725_v31, %v3725_v31 }
 0x2bc   : > { %v2934_v35 = vpop.f32.mrf.mxu2 }
 0x2bd   : > { %v3953_v55 = vadd.f32 %v3952_v5, %v3922_v23  ;;  %v3018_v21 = vadd.f32 %v2934_v35, %v2664_v18  ;;  %v3288_v22 = vpop.f32.mrf.mxu3 }
 0x2be   : > { %v2583_v11 = vpop.f32.mrf.mxu1 }
 0x2bf   : > { %v3372_v46 = vadd.f32 %v3288_v22, %v3018_v21  ;;  %v2665_v27 = vadd.f32 %v2583_v11, %v6005_v58 }
 0x2c0   : > { %v3645_v24 = vpop.f32.mrf.mxu0 }
 0x2c1   : > { %v3726_v15 = vadd.f32 %v3642_v17, %v3372_v46 }
 0x2c3   : > { %v5266_v26 = vpack.c.bf16 %v3726_v15, %v3725_v31  ;;  %v3885_v36 = vadd.f32 %v3884_v51, %v3726_v15  ;;  %v3923_v28 = vmul.f32 %v3726_v15, %v3726_v15 }
 0x2c4   : > { %v2937_v29 = vpop.f32.mrf.mxu2 }
 0x2c5   : > { %5306 = vst [vmem:[%s5666_s8 + $0x48] sm:$0xff] %v5266_v26   ;;  %v3954_v1 = vadd.f32 %v3953_v55, %v3923_v28  ;;  %v3019_v8 = vadd.f32 %v2937_v29, %v2665_v27  ;;  %v3291_v2 = vpop.f32.mrf.mxu3 }
 0x2c6   : > { %v2585_v61 = vpop.f32.mrf.mxu1 }
 0x2c7   : > { %v3373_v4 = vadd.f32 %v3291_v2, %v3019_v8  ;;  %v2666_v43 = vadd.f32 %v2585_v61, %v6014_v13 }
 0x2c8   : > { %v3647_v45 = vpop.f32.mrf.mxu0 }
 0x2c9   : > { %v3727_v32 = vadd.f32 %v3645_v24, %v3373_v4 }
 0x2cb   : > { %v3886_v39 = vadd.f32 %v3885_v36, %v3727_v32  ;;  %v3924_v33 = vmul.f32 %v3727_v32, %v3727_v32 }
 0x2cc   : > { %v2939_v48 = vpop.f32.mrf.mxu2 }
 0x2cd   : > { %v3955_v37 = vadd.f32 %v3954_v1, %v3924_v33  ;;  %v3020_v44 = vadd.f32 %v2939_v48, %v2666_v43  ;;  %v3293_v63 = vpop.f32.mrf.mxu3 }
 0x2ce   : > { %v2588_v53 = vpop.f32.mrf.mxu1 }
 0x2cf   : > { %v3374_v58 = vadd.f32 %v3293_v63, %v3020_v44  ;;  %v2667_v57 = vadd.f32 %v2588_v53, %v6019_v6 }
 0x2d0   : > { %v3650_v47 = vpop.f32.mrf.mxu0 }
 0x2d1   : > { %v3728_v59 = vadd.f32 %v3647_v45, %v3374_v58 }
 0x2d3   : > { %v5271_v16 = vpack.c.bf16 %v3728_v59, %v3727_v32  ;;  %v3887_v3 = vadd.f32 %v3886_v39, %v3728_v59  ;;  %v3925_v56 = vmul.f32 %v3728_v59, %v3728_v59 }
 0x2d4   : > { %v2942_v34 = vpop.f32.mrf.mxu2 }
 0x2d5   : > { %5307 = vst [vmem:[%s5666_s8 + $0x50] sm:$0xff] %v5271_v16   ;;  %v3956_v30 = vadd.f32 %v3955_v37, %v3925_v56  ;;  %v3021_v19 = vadd.f32 %v2942_v34, %v2667_v57  ;;  %v3296_v60 = vpop.f32.mrf.mxu3 }
 0x2d6   : > { %v2590_v54 = vpop.f32.mrf.mxu1 }
 0x2d7   : > { %v3375_v13 = vadd.f32 %v3296_v60, %v3021_v19  ;;  %v2668_v7 = vadd.f32 %v2590_v54, %v6028_v40 }
 0x2d8   : > { %v3652_v49 = vpop.f32.mrf.mxu0 }
 0x2d9   : > { %v3729_v20 = vadd.f32 %v3650_v47, %v3375_v13 }
 0x2db   : > { %v3888_v41 = vadd.f32 %v3887_v3, %v3729_v20  ;;  %v3926_v5 = vmul.f32 %v3729_v20, %v3729_v20 }
 0x2dc   : > { %v2944_v14 = vpop.f32.mrf.mxu2 }
 0x2dd   : > { %v3957_v9 = vadd.f32 %v3956_v30, %v3926_v5  ;;  %v3022_v25 = vadd.f32 %v2944_v14, %v2668_v7  ;;  %v3298_v17 = vpop.f32.mrf.mxu3 }
 0x2de   : > { %v2593_v31 = vpop.f32.mrf.mxu1 }
 0x2df   : > { %v3376_v6 = vadd.f32 %v3298_v17, %v3022_v25  ;;  %v2669_v21 = vadd.f32 %v2593_v31, %v6033_v38 }
 0x2e0   : > { %v3655_v51 = vpop.f32.mrf.mxu0 }
 0x2e1   : > { %v3730_v23 = vadd.f32 %v3652_v49, %v3376_v6 }
 0x2e3   : > { %v5276_v18 = vpack.c.bf16 %v3730_v23, %v3729_v20  ;;  %v3889_v35 = vadd.f32 %v3888_v41, %v3730_v23  ;;  %v3927_v55 = vmul.f32 %v3730_v23, %v3730_v23 }
 0x2e4   : > { %v2947_v22 = vpop.f32.mrf.mxu2 }
 0x2e5   : > { %5308 = vst [vmem:[%s5666_s8 + $0x58] sm:$0xff] %v5276_v18   ;;  %v3958_v11 = vadd.f32 %v3957_v9, %v3927_v55  ;;  %v3023_v46 = vadd.f32 %v2947_v22, %v2669_v21  ;;  %v3301_v24 = vpop.f32.mrf.mxu3 }
 0x2e6   : > { %v2595_v15 = vpop.f32.mrf.mxu1 }
 0x2e7   : > { %v3377_v40 = vadd.f32 %v3301_v24, %v3023_v46  ;;  %v2670_v29 = vadd.f32 %v2595_v15, %v6042_v52 }
 0x2e8   : > { %v3657_v26 = vpop.f32.mrf.mxu0 }
 0x2e9   : > { %v3731_v36 = vadd.f32 %v3655_v51, %v3377_v40 }
 0x2eb   : > { %v3890_v28 = vadd.f32 %v3889_v35, %v3731_v36  ;;  %v3928_v27 = vmul.f32 %v3731_v36, %v3731_v36 }
 0x2ec   : > { %v2949_v1 = vpop.f32.mrf.mxu2 }
 0x2ed   : > { %v3959_v8 = vadd.f32 %v3958_v11, %v3928_v27  ;;  %v3024_v2 = vadd.f32 %v2949_v1, %v2670_v29  ;;  %v3303_v61 = vpop.f32.mrf.mxu3 }
 0x2ee   : > { %v2598_v4 = vpop.f32.mrf.mxu1 }
 0x2ef   : > { %v3378_v38 = vadd.f32 %v3303_v61, %v3024_v2  ;;  %v2671_v48 = vadd.f32 %v2598_v4, %v6047_v50 }
 0x2f0   : > { %v3660_v45 = vpop.f32.mrf.mxu0 }
 0x2f1   : > { %v3732_v32 = vadd.f32 %v3657_v26, %v3378_v38 }
 0x2f3   : > { %v5281_v39 = vpack.c.bf16 %v3732_v32, %v3731_v36  ;;  %v3891_v33 = vadd.f32 %v3890_v28, %v3732_v32  ;;  %v3929_v43 = vmul.f32 %v3732_v32, %v3732_v32 }
 0x2f4   : > { %v2952_v37 = vpop.f32.mrf.mxu2 }
 0x2f5   : > { %5309 = vst [vmem:[%s5666_s8 + $0x60] sm:$0xff] %v5281_v39   ;;  %v3960_v44 = vadd.f32 %v3959_v8, %v3929_v43  ;;  %v3025_v63 = vadd.f32 %v2952_v37, %v2671_v48  ;;  %v3306_v53 = vpop.f32.mrf.mxu3 }
 0x2f6   : > { %v2600_v58 = vpop.f32.mrf.mxu1 }
 0x2f7   : > { %v3379_v52 = vadd.f32 %v3306_v53, %v3025_v63  ;;  %v2672_v56 = vadd.f32 %v2600_v58, %v6056_v0 }
 0x2f8   : > { %v3662_v47 = vpop.f32.mrf.mxu0 }
 0x2f9   : > { %v3733_v59 = vadd.f32 %v3660_v45, %v3379_v52 }
 0x2fb   : > { %v3892_v16 = vadd.f32 %v3891_v33, %v3733_v59  ;;  %v3930_v3 = vmul.f32 %v3733_v59, %v3733_v59 }
 0x2fc   : > { %v2954_v57 = vpop.f32.mrf.mxu2 }
 0x2fd   : > { %v3961_v34 = vadd.f32 %v3960_v44, %v3930_v3  ;;  %v3026_v30 = vadd.f32 %v2954_v57, %v2672_v56  ;;  %v3308_v19 = vpop.f32.mrf.mxu3 }
 0x2fe   : > { %v2603_v60 = vpop.f32.mrf.mxu1 }
 0x2ff   : > { %v3380_v50 = vadd.f32 %v3308_v19, %v3026_v30  ;;  %v2673_v5 = vadd.f32 %v2603_v60, %v6061_v62 }
 0x300   : > { %v3665_v13 = vpop.f32.mrf.mxu0 }
 0x301   : > { %v3734_v54 = vadd.f32 %v3662_v47, %v3380_v50 }
 0x303   : > { %v5286_v49 = vpack.c.bf16 %v3734_v54, %v3733_v59  ;;  %v3893_v20 = vadd.f32 %v3892_v16, %v3734_v54  ;;  %v3931_v41 = vmul.f32 %v3734_v54, %v3734_v54 }
 0x304   : > { %v2957_v7 = vpop.f32.mrf.mxu2 }
 0x305   : > { %5310 = vst [vmem:[%s5666_s8 + $0x68] sm:$0xff] %v5286_v49   ;;  %v3962_v14 = vadd.f32 %v3961_v34, %v3931_v41  ;;  %v3027_v9 = vadd.f32 %v2957_v7, %v2673_v5  ;;  %v3311_v25 = vpop.f32.mrf.mxu3 }
 0x306   : > { %v2605_v17 = vpop.f32.mrf.mxu1 }
 0x307   : > { %v3381_v0 = vadd.f32 %v3311_v25, %v3027_v9  ;;  %v2674_v23 = vadd.f32 %v2605_v17, %v6070_v12 }
 0x308   : > { %v3667_v18 = vpop.f32.mrf.mxu0 }
 0x309   : > { %v3735_v31 = vadd.f32 %v3665_v13, %v3381_v0 }
 0x30b   : > { %v3894_v6 = vadd.f32 %v3893_v20, %v3735_v31  ;;  %v3932_v51 = vmul.f32 %v3735_v31, %v3735_v31 }
 0x30c   : > { %v2959_v35 = vpop.f32.mrf.mxu2 }
 0x30d   : > { %v3963_v55 = vadd.f32 %v3962_v14, %v3932_v51  ;;  %v3028_v21 = vadd.f32 %v2959_v35, %v2674_v23  ;;  %v3313_v22 = vpop.f32.mrf.mxu3 }
 0x30e   : > { %v2608_v11 = vpop.f32.mrf.mxu1 }
 0x30f   : > { %v3382_v62 = vadd.f32 %v3313_v22, %v3028_v21  ;;  %v2675_v26 = vadd.f32 %v2608_v11, %v6075_v10 }
 0x310   : > { %v3670_v29 = vpop.f32.mrf.mxu0 }
 0x311   : > { %v3736_v46 = vadd.f32 %v3667_v18, %v3382_v62 }
 0x313   : > { %v5291_v24 = vpack.c.bf16 %v3736_v46, %v3735_v31  ;;  %v3895_v15 = vadd.f32 %v3894_v6, %v3736_v46  ;;  %v3933_v40 = vmul.f32 %v3736_v46, %v3736_v46 }
 0x314   : > { %v2962_v36 = vpop.f32.mrf.mxu2 }
 0x315   : > { %5311 = vst [vmem:[%s5666_s8 + $0x70] sm:$0xff] %v5291_v24   ;;  %v3964_v28 = vadd.f32 %v3963_v55, %v3933_v40  ;;  %v3029_v27 = vadd.f32 %v2962_v36, %v2675_v26  ;;  %v3316_v12 = vpop.f32.mrf.mxu3 }
 0x316   : > { %v2610_v8 = vpop.f32.mrf.mxu1 }
 0x317   : > { %v3383_v1 = vadd.f32 %v3316_v12, %v3029_v27  ;;  %v2676_v38 = vadd.f32 %v2610_v8, %v6084_v42 }
 0x318   : > { %v3672_v43 = vpop.f32.mrf.mxu0 }
 0x319   : > { %v3737_v2 = vadd.f32 %v3670_v29, %v3383_v1 }
 0x31b   : > { %v3896_v61 = vadd.f32 %v3895_v15, %v3737_v2  ;;  %v3934_v4 = vmul.f32 %v3737_v2, %v3737_v2 }
 0x31c   : > { %v2964_v45 = vpop.f32.mrf.mxu2 }
 0x31d   : > { %v3965_v10 = vadd.f32 %v3964_v28, %v3934_v4  ;;  %v3030_v32 = vadd.f32 %v2964_v45, %v2676_v38  ;;  %v3318_v39 = vpop.f32.mrf.mxu3 }
 0x31f   : > { %v3384_v33 = vadd.f32 %v3318_v39, %v3030_v32 }
 0x321   : > { %v3738_v48 = vadd.f32 %v3672_v43, %v3384_v33 }
 0x323   : > { %v5296_v37 = vpack.c.bf16 %v3738_v48, %v3737_v2  ;;  %v3897_v42 = vadd.f32 %v3896_v61, %v3738_v48  ;;  %v3935_v44 = vmul.f32 %v3738_v48, %v3738_v48 }
 0x325   : > { %5312 = vst [vmem:[%s5666_s8 + $0x78] sm:$0xff] %v5296_v37   ;;  %v3898_v63 = vrot.slane %v3897_v42, 4  ;;  %v3966_v53 = vadd.f32 %v3965_v10, %v3935_v44 }
 0x326   : > { %5395 = shalt.err (!%p5392_p10)
}
 0x327   : > { %s5465_s4 = smov 64   ;;  %s5466_s8 = smov 4   ;;  %v3899_v58 = vadd.f32 %v3898_v63, %v3897_v42  ;;  %v3967_v52 = vrot.slane %v3966_v53, 4  ;;  %vm3974_vm1 = vcmask 1040384   ;;  %v3973_v60 = vld [vmem:[#allocation6] sm:$0x3] }
 0x328   : > { %5319 = dma.vmem_to_hbm [thread:$0]  (%p5529_p6), %s3992_s24, 2048, %s3994_s25, %s3979_s26, %s5465_s4, %s5465_s4, %s5466_s8  }
 0x329   : > { %v3900_v47 = vrot.slane %v3899_v58, 2  ;;  %v3968_v59 = vadd.f32 %v3967_v52, %v3966_v53  ;;  %s5467_s10 = smov [#allocation6]   ;;  %s4008_s17 = sshll.u32 %s6238_s3, 4  ;;  %s4009_s17 = int_to_ptr.hbm [resolvable:$true] %s4008_s17 }
 0x32a   : > { %s4006_s11 = sshll.u32 %s5467_s10, 4  ;;  %s4007_s11 = int_to_ptr.vmem [resolvable:$true] %s4006_s11 }
 0x32b   : > { %v3901_v16 = vadd.f32 %v3900_v47, %v3899_v58  ;;  %v3969_v3 = vrot.slane %v3968_v59, 2 }
 0x32d   : > { %v3902_v56 = vrot.slane %v3901_v16, 1  ;;  %v3970_v57 = vadd.f32 %v3969_v3, %v3968_v59 }
 0x32f   : > { %v3971_v34 = vrot.slane %v3970_v57, 1  ;;  %v3903_v30 = vadd.f32 %v3902_v56, %v3901_v16 }
 0x331   : > { %v3972_v19 = vadd.f32 %v3971_v34, %v3970_v57 }
 0x333   : > { %v3975_v50 = vsel %vm3974_vm1, %v3903_v30, %v3972_v19 }
 0x334   : > { %v3976_v54 = vadd.f32 %v3975_v50, %v3973_v60 }
 0x336   : > { %3977 = vst [vmem:[#allocation6] sm:$0x3] %v3976_v54 }
 0x337   : > { %5321 = dma.vmem_to_hbm [thread:$0]  (%p83_p3), %s4007_s11, 32, %s4009_s17, [#allocation7]  }
 0x338   : > { %5441 = dma.done.wait (%p83_p3), [#allocation7], 32  }
 0x339   : > { %5443 = vsyncadd (%p83_p3), [#allocation7], 4294967264 }
 0x33a PF: > { %s4025_s19 = sand.u32 1, %s5450_s12   ;;  %p5326_p6 = pnand %p4088_p9, %p5533_p8 }
 0x33b   : > { %s4026_s20 = scalar_lea.sflag [#allocation5], %s4025_s19 }
 0x33c   : > { %p5327_p11 = pneg %p5326_p6 }
 0x33e   : > { %5445 = dma.done.wait (%p5327_p11), %s4026_s20, 2048  }
 0x33f   : > { %5447 = vsyncadd (%p5327_p11), %s4026_s20, 4294965248  ;;  %p15_p12 = scmp.ge.s32.totalorder %s5513_s18, 4   ;;  %s6241_s12 = smov %s5454_s13 }
 0x340   : > { %s6242_s13 = smov %s5458_s14  ;;  %s6243_s14 = smov %s5525_s21 }
 0x341   : > { %s6244_s15 = smov %s5513_s18  ;;  %17 = sbr.rel (!%p15_p12) target bundleno = 4 (0x4), region = 131 }
 0x346   :  { %4032 = vsyncpa [#allocation5], 1 }
 0x347   :  { %4034 = vsyncpa [#allocation5 + $0x1], 1 }
 0x348   :  { %4035 = vsyncpa [#allocation7], 1 }

</bundles_post_ra>
